<compile_context>
chip_gen: v5e
topology: v5e:2x2
jax: 0.10.0
libtpu: 0.0.40
codegen_flags: <defaults>
</compile_context>

<pallas_src>
import functools

import jax
import jax.numpy as jnp
from jax.experimental import pallas as pl
from jax.experimental.pallas import tpu as pltpu

N_FEATURES = 19
# encoder / decoder layer sizes: (in, out) per Linear, PyTorch order.
LAYER_DIMS = [
    (N_FEATURES, 200),  # en1
    (200, 100),         # en2
    (100, 50),          # en3
    (50, 15),           # en4
    (15, 50),           # de1
    (50, 100),          # de2
    (100, 200),         # de3
    (200, N_FEATURES),  # de4
]
# Padded widths (sublane / MXU friendly). Zero padding is exact.
PAD = {N_FEATURES: 32, 200: 256, 100: 128, 50: 64, 15: 16}
NEG_SLOPE = 0.01  # nn.LeakyReLU() default


def _round_up(n, m):
    return ((n + m - 1) // m) * m


def _leaky(v):
    return jnp.where(v > 0, v, NEG_SLOPE * v)


def ae19d_kernel(x_ref,
                 w1, b1, w2, b2, w3, b3, w4, b4,
                 w5, b5, w6, b6, w7, b7, w8, b8,
                 out_ref):
    """Feature-major fused forward: h is (features_pad, TILE_B)."""

    def linear(h, w_ref, b_ref):
        w = w_ref[...]                       # (out_pad, in_pad)
        y = jnp.dot(w, h.astype(w.dtype),    # MXU, f32 accumulation
                    preferred_element_type=jnp.float32)
        return y + b_ref[...].astype(jnp.float32)   # (out_pad, 1) lane-bcast

    h = x_ref[...].astype(jnp.float32)       # (IN_PAD, TILE_B)

    # ---- encode ----
    h = _leaky(linear(h, w1, b1))            # en1
    h = _leaky(linear(h, w2, b2))            # en2
    h = _leaky(linear(h, w3, b3))            # en3
    h = linear(h, w4, b4)                    # en4 -> z (no activation here)

    # ---- decode ----
    h = _leaky(h)                            # leaky on z before de1
    h = _leaky(linear(h, w5, b5))            # de1
    h = _leaky(linear(h, w6, b6))            # de2
    h = _leaky(linear(h, w7, b7))            # de3
    h = linear(h, w8, b8)                    # de4 (no activation)

    out_ref[...] = h.astype(out_ref.dtype)   # (OUT_PAD, TILE_B), lane-dense


@functools.partial(jax.jit, static_argnames=("tile_b",))
def ae19d_forward(x, params, *, tile_b=1024):
    """x: (B, 19) float32; params: padded list [w1,b1,...,w8,b8] with
    w_i of shape (out_pad, in_pad) and b_i of shape (out_pad, 1)."""
    B, F = x.shape
    in_pad = params[0].shape[1]      # padded input feature dim
    out_pad = params[14].shape[0]    # padded output feature dim

    # Batch tile: multiple of 128 lanes, capped so small batches stay small.
    tile_b = min(tile_b, _round_up(B, 128))
    b_pad = _round_up(B, tile_b)

    # Feature-major, zero-padded input slab: (in_pad, b_pad).
    x_t = jnp.zeros((in_pad, b_pad), x.dtype).at[:F, :B].set(x.T)

    grid = (b_pad // tile_b,)
    in_specs = [pl.BlockSpec((in_pad, tile_b), lambda i: (0, i))]
    for p in params:
        # Full-array, grid-invariant blocks: weights stay resident in VMEM.
        in_specs.append(pl.BlockSpec(p.shape, lambda i: (0, 0)))
    out_specs = pl.BlockSpec((out_pad, tile_b), lambda i: (0, i))

    out_t = pl.pallas_call(
        ae19d_kernel,
        out_shape=jax.ShapeDtypeStruct((out_pad, b_pad), x.dtype),
        grid=grid,
        in_specs=in_specs,
        out_specs=out_specs,
        compiler_params=pltpu.CompilerParams(
            dimension_semantics=("parallel",),       # megacore on v7x
            vmem_limit_bytes=32 * 1024 * 1024,       # safe on v5e/v6e/v7x
        ),
    )(x_t, *params)

    # Slice away padding and return batch-major (B, 19).
    return out_t[:F, :B].T


def init_params(key):
    """Raw PyTorch-style params: list of (W, b) with W (out, in), b (out,).
    Uniform ±1/sqrt(fan_in) like nn.Linear's default init."""
    raw = []
    for fan_in, fan_out in LAYER_DIMS:
        key, kw, kb = jax.random.split(key, 3)
        bound = 1.0 / float(jnp.sqrt(jnp.float32(fan_in)))
        w = jax.random.uniform(kw, (fan_out, fan_in), jnp.float32,
                               minval=-bound, maxval=bound)
        b = jax.random.uniform(kb, (fan_out,), jnp.float32,
                               minval=-bound, maxval=bound)
        raw.append((w, b))
    return raw


def pad_params(raw, dtype=jnp.float32):
    """Zero-pad each (W, b) to MXU/sublane-friendly shapes for the kernel.
    dtype=jnp.bfloat16 enables the fast bf16 MXU path on v6e/v7x (keep f32
    accumulation); use a looser tolerance if you enable it."""
    padded = []
    for (w, b), (fan_in, fan_out) in zip(raw, LAYER_DIMS):
        ip, op = PAD[fan_in], PAD[fan_out]
        wp = jnp.zeros((op, ip), dtype).at[:fan_out, :fan_in].set(w.astype(dtype))
        bp = jnp.zeros((op, 1), dtype).at[:fan_out, 0].set(b.astype(dtype))
        padded.extend([wp, bp])
    return padded


def ae19d_reference(x, raw):
    """Pure-JAX reference of the PyTorch forward pass (unpadded)."""
    (w1, b1), (w2, b2), (w3, b3), (w4, b4), \
        (w5, b5), (w6, b6), (w7, b7), (w8, b8) = raw
    h = _leaky(x @ w1.T + b1)
    h = _leaky(h @ w2.T + b2)
    h = _leaky(h @ w3.T + b3)
    z = h @ w4.T + b4
    h = _leaky(z)
    h = _leaky(h @ w5.T + b5)
    h = _leaky(h @ w6.T + b6)
    h = _leaky(h @ w7.T + b7)
    return h @ w8.T + b8


if __name__ == "__main__":
    key = jax.random.PRNGKey(0)
    key, kx = jax.random.split(key)

    B = 8
    x = jax.random.normal(kx, (B, N_FEATURES), jnp.float32)

    raw_params = init_params(key)
    params = pad_params(raw_params, jnp.float32)

    out = ae19d_forward(x, params)
    out = jax.block_until_ready(out)

    ref = ae19d_reference(x, raw_params)
    assert out.shape == (B, N_FEATURES)
    assert jnp.allclose(out, ref, atol=1e-4, rtol=1e-4), "mismatch vs reference"

    print("KERNEL_OK")
</pallas_src>

<mosaic_0001>
module attributes {stable_mosaic.version = 11 : i64} {
  func.func @ae19d_kernel(%arg0: i32, %arg1: memref<32x128xf32, #tpu.memory_space<vmem>>, %arg2: memref<256x32xf32, #tpu.memory_space<vmem>>, %arg3: memref<256x1xf32, #tpu.memory_space<vmem>>, %arg4: memref<128x256xf32, #tpu.memory_space<vmem>>, %arg5: memref<128x1xf32, #tpu.memory_space<vmem>>, %arg6: memref<64x128xf32, #tpu.memory_space<vmem>>, %arg7: memref<64x1xf32, #tpu.memory_space<vmem>>, %arg8: memref<16x64xf32, #tpu.memory_space<vmem>>, %arg9: memref<16x1xf32, #tpu.memory_space<vmem>>, %arg10: memref<64x16xf32, #tpu.memory_space<vmem>>, %arg11: memref<64x1xf32, #tpu.memory_space<vmem>>, %arg12: memref<128x64xf32, #tpu.memory_space<vmem>>, %arg13: memref<128x1xf32, #tpu.memory_space<vmem>>, %arg14: memref<256x128xf32, #tpu.memory_space<vmem>>, %arg15: memref<256x1xf32, #tpu.memory_space<vmem>>, %arg16: memref<32x256xf32, #tpu.memory_space<vmem>>, %arg17: memref<32x1xf32, #tpu.memory_space<vmem>>, %arg18: memref<32x128xf32, #tpu.memory_space<vmem>>) attributes {dimension_semantics = [#tpu.dimension_semantics<parallel>], iteration_bounds = array<i64: 1>, scalar_prefetch = 0 : i64, scratch_operands = 0 : i64, tpu.core_type = #tpu.core_type<tc>, window_params = [{transform_indices = @transform_0, window_bounds = array<i64: 32, 128>}, {pipeline_mode = #tpu.pipeline_mode<synchronous>, transform_indices = @transform_1, window_bounds = array<i64: 256, 32>}, {pipeline_mode = #tpu.pipeline_mode<synchronous>, transform_indices = @transform_2, window_bounds = array<i64: 256, 1>}, {pipeline_mode = #tpu.pipeline_mode<synchronous>, transform_indices = @transform_3, window_bounds = array<i64: 128, 256>}, {pipeline_mode = #tpu.pipeline_mode<synchronous>, transform_indices = @transform_4, window_bounds = array<i64: 128, 1>}, {pipeline_mode = #tpu.pipeline_mode<synchronous>, transform_indices = @transform_5, window_bounds = array<i64: 64, 128>}, {pipeline_mode = #tpu.pipeline_mode<synchronous>, transform_indices = @transform_6, window_bounds = array<i64: 64, 1>}, {pipeline_mode = #tpu.pipeline_mode<synchronous>, transform_indices = @transform_7, window_bounds = array<i64: 16, 64>}, {pipeline_mode = #tpu.pipeline_mode<synchronous>, transform_indices = @transform_8, window_bounds = array<i64: 16, 1>}, {pipeline_mode = #tpu.pipeline_mode<synchronous>, transform_indices = @transform_9, window_bounds = array<i64: 64, 16>}, {pipeline_mode = #tpu.pipeline_mode<synchronous>, transform_indices = @transform_10, window_bounds = array<i64: 64, 1>}, {pipeline_mode = #tpu.pipeline_mode<synchronous>, transform_indices = @transform_11, window_bounds = array<i64: 128, 64>}, {pipeline_mode = #tpu.pipeline_mode<synchronous>, transform_indices = @transform_12, window_bounds = array<i64: 128, 1>}, {pipeline_mode = #tpu.pipeline_mode<synchronous>, transform_indices = @transform_13, window_bounds = array<i64: 256, 128>}, {pipeline_mode = #tpu.pipeline_mode<synchronous>, transform_indices = @transform_14, window_bounds = array<i64: 256, 1>}, {pipeline_mode = #tpu.pipeline_mode<synchronous>, transform_indices = @transform_15, window_bounds = array<i64: 32, 256>}, {pipeline_mode = #tpu.pipeline_mode<synchronous>, transform_indices = @transform_16, window_bounds = array<i64: 32, 1>}, {transform_indices = @transform_17, window_bounds = array<i64: 32, 128>}]} {
    %c0 = arith.constant 0 : index
    %c0_0 = arith.constant 0 : index
    %0 = vector.load %arg1[%c0, %c0_0] : memref<32x128xf32, #tpu.memory_space<vmem>>, vector<32x128xf32>
    %c0_1 = arith.constant 0 : index
    %c0_2 = arith.constant 0 : index
    %1 = vector.load %arg2[%c0_1, %c0_2] : memref<256x32xf32, #tpu.memory_space<vmem>>, vector<256x32xf32>
    %cst = arith.constant dense<0.000000e+00> : vector<256x128xf32>
    %2 = tpu.matmul %1, %0, %cst {dimension_numbers = #tpu.dot_dimension_numbers<[1], [0], [0], [1], [0, 0, 1, 1], [], []>} : vector<256x32xf32>, vector<32x128xf32>, vector<256x128xf32> -> vector<256x128xf32>
    %c0_3 = arith.constant 0 : index
    %c0_4 = arith.constant 0 : index
    %3 = vector.load %arg3[%c0_3, %c0_4] : memref<256x1xf32, #tpu.memory_space<vmem>>, vector<256x1xf32>
    %4 = vector.broadcast %3 : vector<256x1xf32> to vector<256x128xf32>
    %5 = arith.addf %2, %4 : vector<256x128xf32>
    %cst_5 = arith.constant 0.000000e+00 : f32
    %6 = vector.broadcast %cst_5 : f32 to vector<256x128xf32>
    %7 = arith.cmpf ogt, %5, %6 : vector<256x128xf32>
    %cst_6 = arith.constant 0.00999999977 : f32
    %8 = vector.broadcast %cst_6 : f32 to vector<256x128xf32>
    %9 = arith.mulf %8, %5 : vector<256x128xf32>
    %10 = arith.select %7, %5, %9 : vector<256x128xi1>, vector<256x128xf32>
    %c0_7 = arith.constant 0 : index
    %c0_8 = arith.constant 0 : index
    %11 = vector.load %arg4[%c0_7, %c0_8] : memref<128x256xf32, #tpu.memory_space<vmem>>, vector<128x256xf32>
    %cst_9 = arith.constant dense<0.000000e+00> : vector<128x128xf32>
    %12 = tpu.matmul %11, %10, %cst_9 {dimension_numbers = #tpu.dot_dimension_numbers<[1], [0], [0], [1], [0, 0, 1, 1], [], []>} : vector<128x256xf32>, vector<256x128xf32>, vector<128x128xf32> -> vector<128x128xf32>
    %c0_10 = arith.constant 0 : index
    %c0_11 = arith.constant 0 : index
    %13 = vector.load %arg5[%c0_10, %c0_11] : memref<128x1xf32, #tpu.memory_space<vmem>>, vector<128x1xf32>
    %14 = vector.broadcast %13 : vector<128x1xf32> to vector<128x128xf32>
    %15 = arith.addf %12, %14 : vector<128x128xf32>
    %cst_12 = arith.constant 0.000000e+00 : f32
    %16 = vector.broadcast %cst_12 : f32 to vector<128x128xf32>
    %17 = arith.cmpf ogt, %15, %16 : vector<128x128xf32>
    %cst_13 = arith.constant 0.00999999977 : f32
    %18 = vector.broadcast %cst_13 : f32 to vector<128x128xf32>
    %19 = arith.mulf %18, %15 : vector<128x128xf32>
    %20 = arith.select %17, %15, %19 : vector<128x128xi1>, vector<128x128xf32>
    %c0_14 = arith.constant 0 : index
    %c0_15 = arith.constant 0 : index
    %21 = vector.load %arg6[%c0_14, %c0_15] : memref<64x128xf32, #tpu.memory_space<vmem>>, vector<64x128xf32>
    %cst_16 = arith.constant dense<0.000000e+00> : vector<64x128xf32>
    %22 = tpu.matmul %21, %20, %cst_16 {dimension_numbers = #tpu.dot_dimension_numbers<[1], [0], [0], [1], [0, 0, 1, 1], [], []>} : vector<64x128xf32>, vector<128x128xf32>, vector<64x128xf32> -> vector<64x128xf32>
    %c0_17 = arith.constant 0 : index
    %c0_18 = arith.constant 0 : index
    %23 = vector.load %arg7[%c0_17, %c0_18] : memref<64x1xf32, #tpu.memory_space<vmem>>, vector<64x1xf32>
    %24 = vector.broadcast %23 : vector<64x1xf32> to vector<64x128xf32>
    %25 = arith.addf %22, %24 : vector<64x128xf32>
    %cst_19 = arith.constant 0.000000e+00 : f32
    %26 = vector.broadcast %cst_19 : f32 to vector<64x128xf32>
    %27 = arith.cmpf ogt, %25, %26 : vector<64x128xf32>
    %cst_20 = arith.constant 0.00999999977 : f32
    %28 = vector.broadcast %cst_20 : f32 to vector<64x128xf32>
    %29 = arith.mulf %28, %25 : vector<64x128xf32>
    %30 = arith.select %27, %25, %29 : vector<64x128xi1>, vector<64x128xf32>
    %c0_21 = arith.constant 0 : index
    %c0_22 = arith.constant 0 : index
    %31 = vector.load %arg8[%c0_21, %c0_22] : memref<16x64xf32, #tpu.memory_space<vmem>>, vector<16x64xf32>
    %cst_23 = arith.constant dense<0.000000e+00> : vector<16x128xf32>
    %32 = tpu.matmul %31, %30, %cst_23 {dimension_numbers = #tpu.dot_dimension_numbers<[1], [0], [0], [1], [0, 0, 1, 1], [], []>} : vector<16x64xf32>, vector<64x128xf32>, vector<16x128xf32> -> vector<16x128xf32>
    %c0_24 = arith.constant 0 : index
    %c0_25 = arith.constant 0 : index
    %33 = vector.load %arg9[%c0_24, %c0_25] : memref<16x1xf32, #tpu.memory_space<vmem>>, vector<16x1xf32>
    %34 = vector.broadcast %33 : vector<16x1xf32> to vector<16x128xf32>
    %35 = arith.addf %32, %34 : vector<16x128xf32>
    %cst_26 = arith.constant 0.000000e+00 : f32
    %36 = vector.broadcast %cst_26 : f32 to vector<16x128xf32>
    %37 = arith.cmpf ogt, %35, %36 : vector<16x128xf32>
    %cst_27 = arith.constant 0.00999999977 : f32
    %38 = vector.broadcast %cst_27 : f32 to vector<16x128xf32>
    %39 = arith.mulf %38, %35 : vector<16x128xf32>
    %40 = arith.select %37, %35, %39 : vector<16x128xi1>, vector<16x128xf32>
    %c0_28 = arith.constant 0 : index
    %c0_29 = arith.constant 0 : index
    %41 = vector.load %arg10[%c0_28, %c0_29] : memref<64x16xf32, #tpu.memory_space<vmem>>, vector<64x16xf32>
    %cst_30 = arith.constant dense<0.000000e+00> : vector<64x128xf32>
    %42 = tpu.matmul %41, %40, %cst_30 {dimension_numbers = #tpu.dot_dimension_numbers<[1], [0], [0], [1], [0, 0, 1, 1], [], []>} : vector<64x16xf32>, vector<16x128xf32>, vector<64x128xf32> -> vector<64x128xf32>
    %c0_31 = arith.constant 0 : index
    %c0_32 = arith.constant 0 : index
    %43 = vector.load %arg11[%c0_31, %c0_32] : memref<64x1xf32, #tpu.memory_space<vmem>>, vector<64x1xf32>
    %44 = vector.broadcast %43 : vector<64x1xf32> to vector<64x128xf32>
    %45 = arith.addf %42, %44 : vector<64x128xf32>
    %cst_33 = arith.constant 0.000000e+00 : f32
    %46 = vector.broadcast %cst_33 : f32 to vector<64x128xf32>
    %47 = arith.cmpf ogt, %45, %46 : vector<64x128xf32>
    %cst_34 = arith.constant 0.00999999977 : f32
    %48 = vector.broadcast %cst_34 : f32 to vector<64x128xf32>
    %49 = arith.mulf %48, %45 : vector<64x128xf32>
    %50 = arith.select %47, %45, %49 : vector<64x128xi1>, vector<64x128xf32>
    %c0_35 = arith.constant 0 : index
    %c0_36 = arith.constant 0 : index
    %51 = vector.load %arg12[%c0_35, %c0_36] : memref<128x64xf32, #tpu.memory_space<vmem>>, vector<128x64xf32>
    %cst_37 = arith.constant dense<0.000000e+00> : vector<128x128xf32>
    %52 = tpu.matmul %51, %50, %cst_37 {dimension_numbers = #tpu.dot_dimension_numbers<[1], [0], [0], [1], [0, 0, 1, 1], [], []>} : vector<128x64xf32>, vector<64x128xf32>, vector<128x128xf32> -> vector<128x128xf32>
    %c0_38 = arith.constant 0 : index
    %c0_39 = arith.constant 0 : index
    %53 = vector.load %arg13[%c0_38, %c0_39] : memref<128x1xf32, #tpu.memory_space<vmem>>, vector<128x1xf32>
    %54 = vector.broadcast %53 : vector<128x1xf32> to vector<128x128xf32>
    %55 = arith.addf %52, %54 : vector<128x128xf32>
    %cst_40 = arith.constant 0.000000e+00 : f32
    %56 = vector.broadcast %cst_40 : f32 to vector<128x128xf32>
    %57 = arith.cmpf ogt, %55, %56 : vector<128x128xf32>
    %cst_41 = arith.constant 0.00999999977 : f32
    %58 = vector.broadcast %cst_41 : f32 to vector<128x128xf32>
    %59 = arith.mulf %58, %55 : vector<128x128xf32>
    %60 = arith.select %57, %55, %59 : vector<128x128xi1>, vector<128x128xf32>
    %c0_42 = arith.constant 0 : index
    %c0_43 = arith.constant 0 : index
    %61 = vector.load %arg14[%c0_42, %c0_43] : memref<256x128xf32, #tpu.memory_space<vmem>>, vector<256x128xf32>
    %cst_44 = arith.constant dense<0.000000e+00> : vector<256x128xf32>
    %62 = tpu.matmul %61, %60, %cst_44 {dimension_numbers = #tpu.dot_dimension_numbers<[1], [0], [0], [1], [0, 0, 1, 1], [], []>} : vector<256x128xf32>, vector<128x128xf32>, vector<256x128xf32> -> vector<256x128xf32>
    %c0_45 = arith.constant 0 : index
    %c0_46 = arith.constant 0 : index
    %63 = vector.load %arg15[%c0_45, %c0_46] : memref<256x1xf32, #tpu.memory_space<vmem>>, vector<256x1xf32>
    %64 = vector.broadcast %63 : vector<256x1xf32> to vector<256x128xf32>
    %65 = arith.addf %62, %64 : vector<256x128xf32>
    %cst_47 = arith.constant 0.000000e+00 : f32
    %66 = vector.broadcast %cst_47 : f32 to vector<256x128xf32>
    %67 = arith.cmpf ogt, %65, %66 : vector<256x128xf32>
    %cst_48 = arith.constant 0.00999999977 : f32
    %68 = vector.broadcast %cst_48 : f32 to vector<256x128xf32>
    %69 = arith.mulf %68, %65 : vector<256x128xf32>
    %70 = arith.select %67, %65, %69 : vector<256x128xi1>, vector<256x128xf32>
    %c0_49 = arith.constant 0 : index
    %c0_50 = arith.constant 0 : index
    %71 = vector.load %arg16[%c0_49, %c0_50] : memref<32x256xf32, #tpu.memory_space<vmem>>, vector<32x256xf32>
    %cst_51 = arith.constant dense<0.000000e+00> : vector<32x128xf32>
    %72 = tpu.matmul %71, %70, %cst_51 {dimension_numbers = #tpu.dot_dimension_numbers<[1], [0], [0], [1], [0, 0, 1, 1], [], []>} : vector<32x256xf32>, vector<256x128xf32>, vector<32x128xf32> -> vector<32x128xf32>
    %c0_52 = arith.constant 0 : index
    %c0_53 = arith.constant 0 : index
    %73 = vector.load %arg17[%c0_52, %c0_53] : memref<32x1xf32, #tpu.memory_space<vmem>>, vector<32x1xf32>
    %74 = vector.broadcast %73 : vector<32x1xf32> to vector<32x128xf32>
    %75 = arith.addf %72, %74 : vector<32x128xf32>
    %c0_54 = arith.constant 0 : index
    %c0_55 = arith.constant 0 : index
    %76 = vector.load %arg18[%c0_54, %c0_55] : memref<32x128xf32, #tpu.memory_space<vmem>>, vector<32x128xf32>
    tpu.vector_store %arg18[%c0_54, %c0_55], %75 {strides = array<i32>} : memref<32x128xf32, #tpu.memory_space<vmem>>, vector<32x128xf32>,
    return
  }
  func.func @transform_0(%arg0: i32) -> (i32, i32) {
    %c0_i32 = arith.constant 0 : i32
    %c0_i32_0 = arith.constant 0 : i32
    return %c0_i32, %arg0 : i32, i32
  }
  func.func @transform_1(%arg0: i32) -> (i32, i32) {
    %c0_i32 = arith.constant 0 : i32
    %c0_i32_0 = arith.constant 0 : i32
    %c0_i32_1 = arith.constant 0 : i32
    return %c0_i32, %c0_i32_0 : i32, i32
  }
  func.func @transform_2(%arg0: i32) -> (i32, i32) {
    %c0_i32 = arith.constant 0 : i32
    %c0_i32_0 = arith.constant 0 : i32
    %c0_i32_1 = arith.constant 0 : i32
    return %c0_i32, %c0_i32_0 : i32, i32
  }
  func.func @transform_3(%arg0: i32) -> (i32, i32) {
    %c0_i32 = arith.constant 0 : i32
    %c0_i32_0 = arith.constant 0 : i32
    %c0_i32_1 = arith.constant 0 : i32
    return %c0_i32, %c0_i32_0 : i32, i32
  }
  func.func @transform_4(%arg0: i32) -> (i32, i32) {
    %c0_i32 = arith.constant 0 : i32
    %c0_i32_0 = arith.constant 0 : i32
    %c0_i32_1 = arith.constant 0 : i32
    return %c0_i32, %c0_i32_0 : i32, i32
  }
  func.func @transform_5(%arg0: i32) -> (i32, i32) {
    %c0_i32 = arith.constant 0 : i32
    %c0_i32_0 = arith.constant 0 : i32
    %c0_i32_1 = arith.constant 0 : i32
    return %c0_i32, %c0_i32_0 : i32, i32
  }
  func.func @transform_6(%arg0: i32) -> (i32, i32) {
    %c0_i32 = arith.constant 0 : i32
    %c0_i32_0 = arith.constant 0 : i32
    %c0_i32_1 = arith.constant 0 : i32
    return %c0_i32, %c0_i32_0 : i32, i32
  }
  func.func @transform_7(%arg0: i32) -> (i32, i32) {
    %c0_i32 = arith.constant 0 : i32
    %c0_i32_0 = arith.constant 0 : i32
    %c0_i32_1 = arith.constant 0 : i32
    return %c0_i32, %c0_i32_0 : i32, i32
  }
  func.func @transform_8(%arg0: i32) -> (i32, i32) {
    %c0_i32 = arith.constant 0 : i32
    %c0_i32_0 = arith.constant 0 : i32
    %c0_i32_1 = arith.constant 0 : i32
    return %c0_i32, %c0_i32_0 : i32, i32
  }
  func.func @transform_9(%arg0: i32) -> (i32, i32) {
    %c0_i32 = arith.constant 0 : i32
    %c0_i32_0 = arith.constant 0 : i32
    %c0_i32_1 = arith.constant 0 : i32
    return %c0_i32, %c0_i32_0 : i32, i32
  }
  func.func @transform_10(%arg0: i32) -> (i32, i32) {
    %c0_i32 = arith.constant 0 : i32
    %c0_i32_0 = arith.constant 0 : i32
    %c0_i32_1 = arith.constant 0 : i32
    return %c0_i32, %c0_i32_0 : i32, i32
  }
  func.func @transform_11(%arg0: i32) -> (i32, i32) {
    %c0_i32 = arith.constant 0 : i32
    %c0_i32_0 = arith.constant 0 : i32
    %c0_i32_1 = arith.constant 0 : i32
    return %c0_i32, %c0_i32_0 : i32, i32
  }
  func.func @transform_12(%arg0: i32) -> (i32, i32) {
    %c0_i32 = arith.constant 0 : i32
    %c0_i32_0 = arith.constant 0 : i32
    %c0_i32_1 = arith.constant 0 : i32
    return %c0_i32, %c0_i32_0 : i32, i32
  }
  func.func @transform_13(%arg0: i32) -> (i32, i32) {
    %c0_i32 = arith.constant 0 : i32
    %c0_i32_0 = arith.constant 0 : i32
    %c0_i32_1 = arith.constant 0 : i32
    return %c0_i32, %c0_i32_0 : i32, i32
  }
  func.func @transform_14(%arg0: i32) -> (i32, i32) {
    %c0_i32 = arith.constant 0 : i32
    %c0_i32_0 = arith.constant 0 : i32
    %c0_i32_1 = arith.constant 0 : i32
    return %c0_i32, %c0_i32_0 : i32, i32
  }
  func.func @transform_15(%arg0: i32) -> (i32, i32) {
    %c0_i32 = arith.constant 0 : i32
    %c0_i32_0 = arith.constant 0 : i32
    %c0_i32_1 = arith.constant 0 : i32
    return %c0_i32, %c0_i32_0 : i32, i32
  }
  func.func @transform_16(%arg0: i32) -> (i32, i32) {
    %c0_i32 = arith.constant 0 : i32
    %c0_i32_0 = arith.constant 0 : i32
    %c0_i32_1 = arith.constant 0 : i32
    return %c0_i32, %c0_i32_0 : i32, i32
  }
  func.func @transform_17(%arg0: i32) -> (i32, i32) {
    %c0_i32 = arith.constant 0 : i32
    %c0_i32_0 = arith.constant 0 : i32
    return %c0_i32, %arg0 : i32, i32
  }
}

</mosaic_0001>

<bundles_post_ra>
// kernel: ae19d_forward.1
= control target key start
LH: loop header
LB: loop body
LE: loop exit
PB: predicated region body
PF: predicated region fallthrough
CT: control target
= control target key end

     0   :  { %v2127_v0 = vmov 0   ;;  %vm284_vm0 = vcmask 261120   ;;  %s3221_s2 = inlined_call_operand.vmem [shape: f32[256,1], index: 2, kind: input, shape index: {}]   ;;  %s3222_s0 = inlined_call_operand.vmem [shape: f32[32,128], index: 0, kind: input, shape index: {}]   ;;  %s3223_s1 = inlined_call_operand.vmem [shape: f32[256,32], index: 1, kind: input, shape index: {}]   ;;  %s3224_s4 = inlined_call_operand.vmem [shape: f32[128,1], index: 4, kind: input, shape index: {}]   ;;  %s3225_s6 = inlined_call_operand.vmem [shape: f32[64,1], index: 6, kind: input, shape index: {}]   ;;  %s3226_s8 = inlined_call_operand.vmem [shape: f32[16,1], index: 8, kind: input, shape index: {}]   ;;  %s3227_s10 = inlined_call_operand.vmem [shape: f32[64,1], index: 10, kind: input, shape index: {}]   ;;  %s3228_s12 = inlined_call_operand.vmem [shape: f32[128,1], index: 12, kind: input, shape index: {}]   ;;  %s3229_s14 = inlined_call_operand.vmem [shape: f32[256,1], index: 14, kind: input, shape index: {}]   ;;  %s3230_s3 = inlined_call_operand.vmem [shape: f32[128,256], index: 3, kind: input, shape index: {}]   ;;  %s3231_s16 = inlined_call_operand.vmem [shape: f32[32,1], index: 16, kind: input, shape index: {}]   ;;  %s3232_s5 = inlined_call_operand.vmem [shape: f32[64,128], index: 5, kind: input, shape index: {}]   ;;  %s3233_s7 = inlined_call_operand.vmem [shape: f32[16,64], index: 7, kind: input, shape index: {}]   ;;  %s3234_s9 = inlined_call_operand.vmem [shape: f32[64,16], index: 9, kind: input, shape index: {}]   ;;  %s3235_s11 = inlined_call_operand.vmem [shape: f32[128,64], index: 11, kind: input, shape index: {}]   ;;  %s3236_s13 = inlined_call_operand.vmem [shape: f32[256,128], index: 13, kind: input, shape index: {}]   ;;  %s3237_s15 = inlined_call_operand.vmem [shape: f32[32,256], index: 15, kind: input, shape index: {}]   ;;  %s3238_s17 = inlined_call_operand.vmem [shape: f32[32,128], index: 17, kind: output, shape index: {}]  }
   0x1   :  { %3241 = sst [smem:[#allocation2_spill]] %s3221_s2  ;;  %2126 = vset.pattern.permute.xlu2 %v2127_v0  ;;  %2125 = vset.pattern.permute.xlu1 %v2127_v0  ;;  %v60_v9 = vld [vmem:[%s3223_s1] sm:$0xff]  ;;  %v61_v13 = vld [vmem:[%s3223_s1 + $0x8] sm:$0xff]  ;;  %v62_v17 = vld [vmem:[%s3223_s1 + $0x10] sm:$0xff] }
   0x2   :  { %3242 = sst [smem:[#allocation3_spill]] %s3222_s0  ;;  %2124 = vset.pattern.permute.xlu0 %v2127_v0  ;;  %v63_v21 = vld [vmem:[%s3223_s1 + $0x18] sm:$0xff]  ;;  %v64_v25 = vld [vmem:[%s3223_s1 + $0x20] sm:$0xff]  ;;  %v65_v29 = vld [vmem:[%s3223_s1 + $0x28] sm:$0xff] }
   0x3   :  { %s3243_s26 = sld [smem:[#allocation2_spill]]  ;;  %v66_v33 = vld [vmem:[%s3223_s1 + $0x30] sm:$0xff]  ;;  %v67_v37 = vld [vmem:[%s3223_s1 + $0x38] sm:$0xff]  ;;  %v68_v41 = vld [vmem:[%s3223_s1 + $0x40] sm:$0xff] }
   0x4   :  { %s3244_s19 = sld [smem:[#allocation3_spill]]  ;;  %v69_v45 = vld [vmem:[%s3223_s1 + $0x48] sm:$0xff]  ;;  %v637_v47 = vld [vmem:[%s3224_s4 + $0x78] sm:$0xff]  ;;  %v70_v49 = vld [vmem:[%s3223_s1 + $0x50] sm:$0xff] }
   0x5   :  { %v635_v48 = vld [vmem:[%s3224_s4 + $0x68] sm:$0xff]  ;;  %v636_v50 = vld [vmem:[%s3224_s4 + $0x70] sm:$0xff]  ;;  %v634_v51 = vld [vmem:[%s3224_s4 + $0x60] sm:$0xff] }
   0x6   :  { %v632_v52 = vld [vmem:[%s3224_s4 + $0x50] sm:$0xff]  ;;  %v71_v53 = vld [vmem:[%s3223_s1 + $0x58] sm:$0xff]  ;;  %v631_v55 = vld [vmem:[%s3224_s4 + $0x48] sm:$0xff] }
   0x7   :  { %v633_v54 = vld [vmem:[%s3224_s4 + $0x58] sm:$0xff]  ;;  %v72_v57 = vld [vmem:[%s3223_s1 + $0x60] sm:$0xff]  ;;  %v628_v59 = vld [vmem:[%s3224_s4 + $0x30] sm:$0xff] }
   0x8   :  { %v629_v56 = vld [vmem:[%s3224_s4 + $0x38] sm:$0xff]  ;;  %v630_v58 = vld [vmem:[%s3224_s4 + $0x40] sm:$0xff]  ;;  %v73_v61 = vld [vmem:[%s3223_s1 + $0x68] sm:$0xff] }
   0x9   :  { %v107_v1 = vld [vmem:[%s3243_s26 + $0x78] sm:$0xff]  ;;  %v105_v2 = vld [vmem:[%s3243_s26 + $0x68] sm:$0xff]  ;;  %v104_v8 = vld [vmem:[%s3243_s26 + $0x60] sm:$0xff] }
   0xa   :  { %v103_v3 = vld [vmem:[%s3243_s26 + $0x58] sm:$0xff]  ;;  %191 = vperm.xlu1 %2125, %v105_v2   ;;  %201 = vperm.xlu0 %2124, %v107_v1   ;;  %v58_v5 = vld [vmem:[%s3244_s19 + $0x10] sm:$0xff]  ;;  %v57_v6 = vld [vmem:[%s3244_s19 + $0x8] sm:$0xff] }
   0xb   :  { %v59_v4 = vld [vmem:[%s3244_s19 + $0x18] sm:$0xff]  ;;  %181 = vperm.xlu2 %2126, %v103_v3   ;;  %v56_v7 = vld [vmem:[%s3244_s19] sm:$0xff]  ;;  %v106_v10 = vld [vmem:[%s3243_s26 + $0x70] sm:$0xff] }
   0xc   :  { %393 = vmatpush.msra.mxu0 %v59_v4  ;;  %v102_v11 = vld [vmem:[%s3243_s26 + $0x50] sm:$0xff]  ;;  %v100_v12 = vld [vmem:[%s3243_s26 + $0x40] sm:$0xff]  ;;  %v101_v14 = vld [vmem:[%s3243_s26 + $0x48] sm:$0xff] }
   0xd   :  { %v99_v15 = vld [vmem:[%s3243_s26 + $0x38] sm:$0xff]  ;;  %v97_v16 = vld [vmem:[%s3243_s26 + $0x28] sm:$0xff]  ;;  %v98_v18 = vld [vmem:[%s3243_s26 + $0x30] sm:$0xff] }
   0xe   :  { %394 = vmatpush.msra.mxu0 %v58_v5  ;;  %v96_v19 = vld [vmem:[%s3243_s26 + $0x20] sm:$0xff]  ;;  %v94_v20 = vld [vmem:[%s3243_s26 + $0x10] sm:$0xff]  ;;  %v95_v22 = vld [vmem:[%s3243_s26 + $0x18] sm:$0xff] }
   0xf   :  { %v93_v23 = vld [vmem:[%s3243_s26 + $0x8] sm:$0xff]  ;;  %v123_v24 = vld [vmem:[%s3243_s26 + $0xf8] sm:$0xff]  ;;  %v92_v26 = vld [vmem:[%s3243_s26] sm:$0xff] }
  0x10   :  { %395 = vmatpush.msra.mxu0 %v57_v6  ;;  %v122_v27 = vld [vmem:[%s3243_s26 + $0xf0] sm:$0xff]  ;;  %v120_v28 = vld [vmem:[%s3243_s26 + $0xe0] sm:$0xff]  ;;  %v121_v30 = vld [vmem:[%s3243_s26 + $0xe8] sm:$0xff] }
  0x11   :  { %v119_v31 = vld [vmem:[%s3243_s26 + $0xd8] sm:$0xff]  ;;  %v117_v32 = vld [vmem:[%s3243_s26 + $0xc8] sm:$0xff]  ;;  %v118_v34 = vld [vmem:[%s3243_s26 + $0xd0] sm:$0xff] }
  0x12   :  { %396 = vmatpush.msra.mxu0 %v56_v7  ;;  %186 = vperm.xlu1 %2125, %v104_v8   ;;  %v116_v35 = vld [vmem:[%s3243_s26 + $0xc0] sm:$0xff]  ;;  %v114_v36 = vld [vmem:[%s3243_s26 + $0xb0] sm:$0xff]  ;;  %v115_v38 = vld [vmem:[%s3243_s26 + $0xb8] sm:$0xff] }
  0x13   :  { %2017 = vmatmul.msk.f32.vlgmr.msra.gmra.mxu0 %vm284_vm0, %v60_v9  ;;  %196 = vperm.xlu0 %2124, %v106_v10   ;;  %v113_v39 = vld [vmem:[%s3243_s26 + $0xa8] sm:$0xff]  ;;  %v111_v40 = vld [vmem:[%s3243_s26 + $0x98] sm:$0xff]  ;;  %v112_v42 = vld [vmem:[%s3243_s26 + $0xa0] sm:$0xff] }
  0x14   :  { %176 = vperm.xlu2 %2126, %v102_v11   ;;  %v110_v43 = vld [vmem:[%s3243_s26 + $0x90] sm:$0xff]  ;;  %v108_v44 = vld [vmem:[%s3243_s26 + $0x80] sm:$0xff]  ;;  %v109_v46 = vld [vmem:[%s3243_s26 + $0x88] sm:$0xff] }
  0x15   :  { %v626_v60 = vld [vmem:[%s3224_s4 + $0x20] sm:$0xff]  ;;  %v627_v62 = vld [vmem:[%s3224_s4 + $0x28] sm:$0xff]  ;;  %v625_v63 = vld [vmem:[%s3224_s4 + $0x18] sm:$0xff] }
  0x16   :  { %v623_v0 = vld [vmem:[%s3224_s4 + $0x8] sm:$0xff]  ;;  %v74_v1 = vld [vmem:[%s3223_s1 + $0x70] sm:$0xff]  ;;  %v622_v3 = vld [vmem:[%s3224_s4] sm:$0xff] }
  0x17   :  { %v624_v2 = vld [vmem:[%s3224_s4 + $0x10] sm:$0xff]  ;;  %v75_v5 = vld [vmem:[%s3223_s1 + $0x78] sm:$0xff]  ;;  %v909_v7 = vld [vmem:[%s3225_s6 + $0x28] sm:$0xff] }
  0x18   :  { %v910_v4 = vld [vmem:[%s3225_s6 + $0x30] sm:$0xff]  ;;  %v911_v6 = vld [vmem:[%s3225_s6 + $0x38] sm:$0xff]  ;;  %v76_v10 = vld [vmem:[%s3223_s1 + $0x80] sm:$0xff] }
  0x19   :  { %v907_v8 = vld [vmem:[%s3225_s6 + $0x18] sm:$0xff]  ;;  %v908_v11 = vld [vmem:[%s3225_s6 + $0x20] sm:$0xff] }
  0x1a   :  { %166 = vperm.xlu1 %2125, %v100_v12   ;;  %v906_v12 = vld [vmem:[%s3225_s6 + $0x10] sm:$0xff] }
  0x1b   :  { %2018 = vmatmul.msk.f32.gmra.mxu0 %vm284_vm0, %v61_v13  ;;  %171 = vperm.xlu0 %2124, %v101_v14   ;;  %v904_v13 = vld [vmem:[%s3225_s6] sm:$0xff] }
  0x1c   :  { %161 = vperm.xlu2 %2126, %v99_v15   ;;  %v77_v15 = vld [vmem:[%s3223_s1 + $0x88] sm:$0xff] }
  0x22   :  { %151 = vperm.xlu1 %2125, %v97_v16   ;;  %v905_v16 = vld [vmem:[%s3225_s6 + $0x8] sm:$0xff] }
  0x23   :  { %2019 = vmatmul.msk.f32.gmra.mxu0 %vm284_vm0, %v62_v17  ;;  %156 = vperm.xlu0 %2124, %v98_v18   ;;  %v1020_v17 = vld [vmem:[%s3226_s8 + $0x8] sm:$0xff]  ;;  %v1082_v18 = vld [vmem:[%s3227_s10 + $0x38] sm:$0xff] }
  0x24   :  { %146 = vperm.xlu2 %2126, %v96_v19  }
  0x2a   :  { %136 = vperm.xlu1 %2125, %v94_v20   ;;  %v78_v20 = vld [vmem:[%s3223_s1 + $0x90] sm:$0xff] }
  0x2b   :  { %2020 = vmatmul.msk.f32.gmra.mxu0 %vm284_vm0, %v63_v21  ;;  %141 = vperm.xlu0 %2124, %v95_v22   ;;  %v1019_v21 = vld [vmem:[%s3226_s8] sm:$0xff]  ;;  %v1081_v22 = vld [vmem:[%s3227_s10 + $0x30] sm:$0xff] }
  0x2c   :  { %131 = vperm.xlu2 %2126, %v93_v23   ;;  %v1079_v23 = vld [vmem:[%s3227_s10 + $0x20] sm:$0xff] }
  0x32   :  { %281 = vperm.xlu1 %2125, %v123_v24  }
  0x33   :  { %2021 = vmatmul.msk.f32.gmra.mxu0 %vm284_vm0, %v64_v25  ;;  %126 = vperm.xlu0 %2124, %v92_v26   ;;  %v79_v25 = vld [vmem:[%s3223_s1 + $0x98] sm:$0xff]  ;;  %v1080_v26 = vld [vmem:[%s3227_s10 + $0x28] sm:$0xff] }
  0x34   :  { %276 = vperm.xlu2 %2126, %v122_v27   ;;  %v1078_v27 = vld [vmem:[%s3227_s10 + $0x18] sm:$0xff] }
  0x3a   :  { %266 = vperm.xlu1 %2125, %v120_v28   ;;  %v1076_v28 = vld [vmem:[%s3227_s10 + $0x8] sm:$0xff] }
  0x3b   :  { %2022 = vmatmul.msk.f32.gmra.mxu0 %vm284_vm0, %v65_v29  ;;  %271 = vperm.xlu0 %2124, %v121_v30   ;;  %v80_v30 = vld [vmem:[%s3223_s1 + $0xa0] sm:$0xff] }
  0x3c   :  { %261 = vperm.xlu2 %2126, %v119_v31   ;;  %v1077_v31 = vld [vmem:[%s3227_s10 + $0x10] sm:$0xff] }
  0x42   :  { %251 = vperm.xlu1 %2125, %v117_v32   ;;  %v1075_v32 = vld [vmem:[%s3227_s10] sm:$0xff] }
  0x43   :  { %2023 = vmatmul.msk.f32.gmra.mxu0 %vm284_vm0, %v66_v33  ;;  %256 = vperm.xlu0 %2124, %v118_v34   ;;  %v1243_v33 = vld [vmem:[%s3228_s12 + $0x70] sm:$0xff] }
  0x44   :  { %246 = vperm.xlu2 %2126, %v116_v35   ;;  %v81_v35 = vld [vmem:[%s3223_s1 + $0xa8] sm:$0xff] }
  0x4a   :  { %236 = vperm.xlu1 %2125, %v114_v36   ;;  %v1244_v36 = vld [vmem:[%s3228_s12 + $0x78] sm:$0xff] }
  0x4b   :  { %2024 = vmatmul.msk.f32.gmra.mxu0 %vm284_vm0, %v67_v37  ;;  %241 = vperm.xlu0 %2124, %v115_v38   ;;  %v1242_v37 = vld [vmem:[%s3228_s12 + $0x68] sm:$0xff]  ;;  %v1240_v38 = vld [vmem:[%s3228_s12 + $0x58] sm:$0xff] }
  0x4c   :  { %231 = vperm.xlu2 %2126, %v113_v39  }
  0x52   :  { %221 = vperm.xlu1 %2125, %v111_v40   ;;  %v82_v40 = vld [vmem:[%s3223_s1 + $0xb0] sm:$0xff] }
  0x53   :  { %2025 = vmatmul.msk.f32.gmra.mxu0 %vm284_vm0, %v68_v41  ;;  %226 = vperm.xlu0 %2124, %v112_v42   ;;  %v1241_v41 = vld [vmem:[%s3228_s12 + $0x60] sm:$0xff]  ;;  %v1239_v42 = vld [vmem:[%s3228_s12 + $0x50] sm:$0xff] }
  0x54   :  { %216 = vperm.xlu2 %2126, %v110_v43   ;;  %v1237_v43 = vld [vmem:[%s3228_s12 + $0x40] sm:$0xff] }
  0x5a   :  { %206 = vperm.xlu1 %2125, %v108_v44  }
  0x5b   :  { %2026 = vmatmul.msk.f32.gmra.mxu0 %vm284_vm0, %v69_v45  ;;  %211 = vperm.xlu0 %2124, %v109_v46   ;;  %v83_v45 = vld [vmem:[%s3223_s1 + $0xb8] sm:$0xff]  ;;  %v1238_v46 = vld [vmem:[%s3228_s12 + $0x48] sm:$0xff] }
  0x5c   :  { %715 = vperm.xlu2 %2126, %v637_v47   ;;  %v1236_v47 = vld [vmem:[%s3228_s12 + $0x38] sm:$0xff] }
  0x62   :  { %705 = vperm.xlu1 %2125, %v635_v48   ;;  %v1234_v48 = vld [vmem:[%s3228_s12 + $0x28] sm:$0xff] }
  0x63   :  { %2027 = vmatmul.msk.f32.gmra.mxu0 %vm284_vm0, %v70_v49  ;;  %710 = vperm.xlu0 %2124, %v636_v50   ;;  %v84_v50 = vld [vmem:[%s3223_s1 + $0xc0] sm:$0xff] }
  0x64   :  { %700 = vperm.xlu2 %2126, %v634_v51   ;;  %v1235_v51 = vld [vmem:[%s3228_s12 + $0x30] sm:$0xff] }
  0x6a   :  { %690 = vperm.xlu1 %2125, %v632_v52   ;;  %v1233_v52 = vld [vmem:[%s3228_s12 + $0x20] sm:$0xff] }
  0x6b   :  { %2028 = vmatmul.msk.f32.gmra.mxu0 %vm284_vm0, %v71_v53  ;;  %695 = vperm.xlu0 %2124, %v633_v54   ;;  %v1231_v53 = vld [vmem:[%s3228_s12 + $0x10] sm:$0xff] }
  0x6c   :  { %685 = vperm.xlu2 %2126, %v631_v55   ;;  %v85_v55 = vld [vmem:[%s3223_s1 + $0xc8] sm:$0xff] }
  0x72   :  { %675 = vperm.xlu1 %2125, %v629_v56   ;;  %v1232_v56 = vld [vmem:[%s3228_s12 + $0x18] sm:$0xff] }
  0x73   :  { %2029 = vmatmul.msk.f32.gmra.mxu0 %vm284_vm0, %v72_v57  ;;  %680 = vperm.xlu0 %2124, %v630_v58   ;;  %v1230_v57 = vld [vmem:[%s3228_s12 + $0x8] sm:$0xff]  ;;  %v1533_v58 = vld [vmem:[%s3229_s14 + $0x78] sm:$0xff] }
  0x74   :  { %670 = vperm.xlu2 %2126, %v628_v59  }
  0x7a   :  { %660 = vperm.xlu1 %2125, %v626_v60   ;;  %v86_v60 = vld [vmem:[%s3223_s1 + $0xd0] sm:$0xff] }
  0x7b   :  { %2030 = vmatmul.msk.f32.gmra.mxu0 %vm284_vm0, %v73_v61  ;;  %665 = vperm.xlu0 %2124, %v627_v62   ;;  %v1229_v61 = vld [vmem:[%s3228_s12] sm:$0xff]  ;;  %v1532_v62 = vld [vmem:[%s3229_s14 + $0x70] sm:$0xff] }
  0x7c   :  { %655 = vperm.xlu2 %2126, %v625_v63   ;;  %v1530_v63 = vld [vmem:[%s3229_s14 + $0x60] sm:$0xff] }
  0x82   :  { %645 = vperm.xlu1 %2125, %v623_v0  }
  0x83   :  { %2031 = vmatmul.msk.f32.gmra.mxu0 %vm284_vm0, %v74_v1  ;;  %650 = vperm.xlu0 %2124, %v624_v2   ;;  %v87_v1 = vld [vmem:[%s3223_s1 + $0xd8] sm:$0xff]  ;;  %v1531_v2 = vld [vmem:[%s3229_s14 + $0x68] sm:$0xff] }
  0x84   :  { %640 = vperm.xlu2 %2126, %v622_v3   ;;  %v1529_v3 = vld [vmem:[%s3229_s14 + $0x58] sm:$0xff] }
  0x8a   :  { %944 = vperm.xlu1 %2125, %v910_v4   ;;  %v202_v4 = vpop.permute.xlu0 %201 }
  0x8b   :  { %2032 = vmatmul.msk.f32.gmra.mxu0 %vm284_vm0, %v75_v5  ;;  %949 = vperm.xlu0 %2124, %v911_v6   ;;  %v1527_v5 = vld [vmem:[%s3229_s14 + $0x48] sm:$0xff] }
  0x8c   :  { %939 = vperm.xlu2 %2126, %v909_v7   ;;  %v88_v7 = vld [vmem:[%s3223_s1 + $0xe0] sm:$0xff] }
  0x90   :  { %v2450_v9 = vpop.f32.mrf.mxu0 }
  0x92   :  { %929 = vperm.xlu1 %2125, %v907_v8   ;;  %v1528_v8 = vld [vmem:[%s3229_s14 + $0x50] sm:$0xff] }
  0x93   :  { %2033 = vmatmul.msk.f32.gmra.mxu0 %vm284_vm0, %v76_v10  ;;  %934 = vperm.xlu0 %2124, %v908_v11   ;;  %v1526_v10 = vld [vmem:[%s3229_s14 + $0x40] sm:$0xff]  ;;  %v192_v11 = vpop.permute.xlu1 %191 }
  0x94   :  { %924 = vperm.xlu2 %2126, %v906_v12   ;;  %v182_v12 = vpop.permute.xlu2 %181 }
  0x98   :  { %v2465_v14 = vpop.f32.mrf.mxu0 }
  0x9a   :  { %914 = vperm.xlu1 %2125, %v904_v13   ;;  %v1524_v13 = vld [vmem:[%s3229_s14 + $0x30] sm:$0xff] }
  0x9b   :  { %2034 = vmatmul.msk.f32.gmra.mxu0 %vm284_vm0, %v77_v15  ;;  %919 = vperm.xlu0 %2124, %v905_v16   ;;  %v197_v15 = vpop.permute.xlu0 %196 }
  0x9c   :  { %1028 = vperm.xlu2 %2126, %v1020_v17   ;;  %v89_v17 = vld [vmem:[%s3223_s1 + $0xe8] sm:$0xff] }
  0xa0   :  { %v2480_v19 = vpop.f32.mrf.mxu0 }
  0xa2   :  { %1120 = vperm.xlu1 %2125, %v1082_v18   ;;  %v1525_v18 = vld [vmem:[%s3229_s14 + $0x38] sm:$0xff] }
  0xa3   :  { %2035 = vmatmul.msk.f32.gmra.mxu0 %vm284_vm0, %v78_v20  ;;  %1023 = vperm.xlu0 %2124, %v1019_v21   ;;  %v1523_v20 = vld [vmem:[%s3229_s14 + $0x28] sm:$0xff]  ;;  %v1521_v21 = vld [vmem:[%s3229_s14 + $0x18] sm:$0xff] }
  0xa4   :  { %1115 = vperm.xlu2 %2126, %v1081_v22   ;;  %v187_v22 = vpop.permute.xlu1 %186 }
  0xa8   :  { %v2495_v24 = vpop.f32.mrf.mxu0 }
  0xaa   :  { %1105 = vperm.xlu1 %2125, %v1079_v23  }
  0xab   :  { %2036 = vmatmul.msk.f32.gmra.mxu0 %vm284_vm0, %v79_v25  ;;  %1110 = vperm.xlu0 %2124, %v1080_v26   ;;  %v90_v25 = vld [vmem:[%s3223_s1 + $0xf0] sm:$0xff]  ;;  %v1522_v26 = vld [vmem:[%s3229_s14 + $0x20] sm:$0xff] }
  0xac   :  { %1100 = vperm.xlu2 %2126, %v1078_v27   ;;  %v177_v27 = vpop.permute.xlu2 %176 }
  0xb0   :  { %v2510_v29 = vpop.f32.mrf.mxu0 }
  0xb2   :  { %1090 = vperm.xlu1 %2125, %v1076_v28   ;;  %v1520_v28 = vld [vmem:[%s3229_s14 + $0x10] sm:$0xff] }
  0xb3   :  { %2037 = vmatmul.msk.f32.gmra.mxu0 %vm284_vm0, %v80_v30  ;;  %1095 = vperm.xlu0 %2124, %v1077_v31   ;;  %v172_v30 = vpop.permute.xlu0 %171 }
  0xb4   :  { %1085 = vperm.xlu2 %2126, %v1075_v32   ;;  %v1518_v32 = vld [vmem:[%s3229_s14] sm:$0xff] }
  0xb8   :  { %v2525_v34 = vpop.f32.mrf.mxu0 }
  0xba   :  { %1317 = vperm.xlu1 %2125, %v1243_v33  }
  0xbb   :  { %2038 = vmatmul.msk.f32.gmra.mxu0 %vm284_vm0, %v81_v35  ;;  %1322 = vperm.xlu0 %2124, %v1244_v36   ;;  %v91_v35 = vld [vmem:[%s3223_s1 + $0xf8] sm:$0xff]  ;;  %v1519_v36 = vld [vmem:[%s3229_s14 + $0x8] sm:$0xff] }
  0xbc   :  { %1312 = vperm.xlu2 %2126, %v1242_v37  }
  0xc0   :  { %v2540_v39 = vpop.f32.mrf.mxu0 }
  0xc2   :  { %1302 = vperm.xlu1 %2125, %v1240_v38  }
  0xc3   :  { %2039 = vmatmul.msk.f32.gmra.mxu0 %vm284_vm0, %v82_v40  ;;  %1307 = vperm.xlu0 %2124, %v1241_v41   ;;  %v1549_v40 = vld [vmem:[%s3229_s14 + $0xf8] sm:$0xff]  ;;  %v167_v41 = vpop.permute.xlu1 %166 }
  0xc4   :  { %1297 = vperm.xlu2 %2126, %v1239_v42   ;;  %v162_v42 = vpop.permute.xlu2 %161 }
  0xc8   :  { %v2555_v44 = vpop.f32.mrf.mxu0 }
  0xca   :  { %1287 = vperm.xlu1 %2125, %v1237_v43  }
  0xcb   :  { %2040 = vmatmul.msk.f32.gmra.mxu0 %vm284_vm0, %v83_v45  ;;  %1292 = vperm.xlu0 %2124, %v1238_v46  }
  0xcc   :  { %1282 = vperm.xlu2 %2126, %v1236_v47   ;;  %v157_v47 = vpop.permute.xlu0 %156 }
  0xd0   :  { %v2570_v49 = vpop.f32.mrf.mxu0 }
  0xd2   :  { %1272 = vperm.xlu1 %2125, %v1234_v48  }
  0xd3   :  { %2041 = vmatmul.msk.f32.gmra.mxu0 %vm284_vm0, %v84_v50  ;;  %1277 = vperm.xlu0 %2124, %v1235_v51  }
  0xd4   :  { %1267 = vperm.xlu2 %2126, %v1233_v52  }
  0xd8   :  { %v2585_v54 = vpop.f32.mrf.mxu0 }
  0xda   :  { %1257 = vperm.xlu1 %2125, %v1231_v53  }
  0xdb   :  { %2042 = vmatmul.msk.f32.gmra.mxu0 %vm284_vm0, %v85_v55  ;;  %1262 = vperm.xlu0 %2124, %v1232_v56   ;;  %v1547_v55 = vld [vmem:[%s3229_s14 + $0xe8] sm:$0xff] }
  0xdc   :  { %1252 = vperm.xlu2 %2126, %v1230_v57  }
  0xe0   :  { %v2600_v59 = vpop.f32.mrf.mxu0 }
  0xe1   :  { %v429_v52 = vadd.f32 %v2600_v59, %v177_v27  ;;  %v1546_v59 = vld [vmem:[%s3229_s14 + $0xe0] sm:$0xff] }
  0xe2   :  { %1627 = vperm.xlu1 %2125, %v1533_v58   ;;  %v1548_v58 = vld [vmem:[%s3229_s14 + $0xf0] sm:$0xff] }
  0xe3   :  { %2043 = vmatmul.msk.f32.gmra.mxu0 %vm284_vm0, %v86_v60  ;;  %1247 = vperm.xlu0 %2124, %v1229_v61   ;;  %v426_v60 = vadd.f32 %v2585_v54, %v172_v30  ;;  %vm504_vm6 = vcmp.gt.f32.partialorder %v429_v52, 0.0  ;;  %v420_v54 = vadd.f32 %v2555_v44, %v162_v42  ;;  %v1545_v44 = vld [vmem:[%s3229_s14 + $0xd8] sm:$0xff] }
  0xe4   :  { %1622 = vperm.xlu2 %2126, %v1532_v62  }
  0xe5   :  { %vm503_vm7 = vcmp.gt.f32.partialorder %v426_v60, 0.0  ;;  %vm501_vm9 = vcmp.gt.f32.partialorder %v420_v54, 0.0 }
  0xe8   :  { %v431_v0 = vpop.f32.mrf.mxu0 }
  0xe9   :  { %v432_v48 = vadd.f32 %v431_v0, %v182_v12 }
  0xea   :  { %1612 = vperm.xlu1 %2125, %v1530_v63   ;;  %v423_v63 = vadd.f32 %v2570_v49, %v167_v41  ;;  %v1544_v49 = vld [vmem:[%s3229_s14 + $0xd0] sm:$0xff]  ;;  %v1538_v41 = vld [vmem:[%s3229_s14 + $0xa0] sm:$0xff] }
  0xeb   :  { %2044 = vmatmul.msk.f32.gmra.mxu0 %vm284_vm0, %v87_v1  ;;  %1617 = vperm.xlu0 %2124, %v1531_v2   ;;  %v537_v62 = vmul.f32 0.01, %v432_v48  ;;  %vm505_vm5 = vcmp.gt.f32.partialorder %v432_v48, 0.0  ;;  %v536_v1 = vmul.f32 0.01, %v429_v52  ;;  %v152_v2 = vpop.permute.xlu1 %151 }
  0xec   :  { %1607 = vperm.xlu2 %2126, %v1529_v3   ;;  %v147_v3 = vpop.permute.xlu2 %146  ;;  %vm502_vm8 = vcmp.gt.f32.partialorder %v423_v63, 0.0  ;;  %v414_v12 = vadd.f32 %v2525_v34, %v152_v2  ;;  %v598_v2 = vld [vmem:[%s3230_s3 + $0x40] sm:$0xff] }
  0xee   :  { %vm499_vm11 = vcmp.gt.f32.partialorder %v414_v12, 0.0 }
  0xf0   :  { %v434_v6 = vpop.f32.mrf.mxu0 }
  0xf1   :  { %v435_v43 = vadd.f32 %v434_v6, %v187_v22  ;;  %v142_v6 = vpop.permute.xlu0 %141 }
  0xf2   :  { %1597 = vperm.xlu1 %2125, %v1527_v5   ;;  %v535_v5 = vmul.f32 0.01, %v426_v60 }
  0xf3   :  { %2045 = vmatmul.msk.f32.gmra.mxu0 %vm284_vm0, %v88_v7  ;;  %1602 = vperm.xlu0 %2124, %v1528_v8   ;;  %v538_v56 = vmul.f32 0.01, %v435_v43  ;;  %vm506_vm4 = vcmp.gt.f32.partialorder %v435_v43, 0.0  ;;  %v417_v7 = vadd.f32 %v2540_v39, %v157_v47  ;;  %v568_v8 = vsel %vm504_vm6, %v429_v52, %v536_v1  ;;  %v1543_v39 = vld [vmem:[%s3229_s14 + $0xc8] sm:$0xff]  ;;  %v137_v22 = vpop.permute.xlu1 %136  ;;  %v590_v47 = vld [vmem:[%s3230_s3] sm:$0xff]  ;;  %v1536_v52 = vld [vmem:[%s3229_s14 + $0x90] sm:$0xff] }
  0xf4   :  { %1592 = vperm.xlu2 %2126, %v1526_v10   ;;  %v534_v10 = vmul.f32 0.01, %v423_v63 }
  0xf5   :  { %v570_v0 = vsel %vm506_vm4, %v435_v43, %v538_v56  ;;  %vm500_vm10 = vcmp.gt.f32.partialorder %v417_v7, 0.0  ;;  %v1928_v56 = vld [vmem:[%s3231_s16 + $0x8] sm:$0xff] }
  0xf8   :  { %v437_v16 = vpop.f32.mrf.mxu0 }
  0xf9   :  { %v438_v37 = vadd.f32 %v437_v16, %v192_v11  ;;  %v411_v16 = vadd.f32 %v2510_v29, %v147_v3  ;;  %v1541_v29 = vld [vmem:[%s3229_s14 + $0xb8] sm:$0xff] }
  0xfa   :  { %1582 = vperm.xlu1 %2125, %v1524_v13   ;;  %v567_v13 = vsel %vm503_vm7, %v426_v60, %v535_v5  ;;  %v1927_v60 = vld [vmem:[%s3231_s16] sm:$0xff] }
  0xfb   :  { %2046 = vmatmul.msk.f32.gmra.mxu0 %vm284_vm0, %v89_v17  ;;  %1587 = vperm.xlu0 %2124, %v1525_v18   ;;  %v539_v51 = vmul.f32 0.01, %v438_v37  ;;  %vm507_vm3 = vcmp.gt.f32.partialorder %v438_v37, 0.0  ;;  %v566_v17 = vsel %vm502_vm8, %v423_v63, %v534_v10  ;;  %v532_v18 = vmul.f32 0.01, %v417_v7  ;;  %v1930_v63 = vld [vmem:[%s3231_s16 + $0x18] sm:$0xff]  ;;  %v282_v10 = vpop.permute.xlu1 %281 }
  0xfc   :  { %1577 = vperm.xlu2 %2126, %v1523_v20   ;;  %v408_v20 = vadd.f32 %v2495_v24, %v142_v6  ;;  %v530_v27 = vmul.f32 0.01, %v411_v16  ;;  %v1542_v24 = vld [vmem:[%s3229_s14 + $0xc0] sm:$0xff]  ;;  %vm498_vm12 = vcmp.gt.f32.partialorder %v411_v16, 0.0 }
  0xfd   :  { %v571_v61 = vsel %vm507_vm3, %v438_v37, %v539_v51  ;;  %v602_v5 = vld [vmem:[%s3230_s3 + $0x60] sm:$0xff] }
  0xfe   :  { %vm497_vm13 = vcmp.gt.f32.partialorder %v408_v20, 0.0 }
 0x100   :  { %v440_v23 = vpop.f32.mrf.mxu0 }
 0x101   :  { %v441_v31 = vadd.f32 %v440_v23, %v197_v15  ;;  %v533_v15 = vmul.f32 0.01, %v420_v54  ;;  %v132_v23 = vpop.permute.xlu2 %131 }
 0x102   :  { %1567 = vperm.xlu1 %2125, %v1521_v21   ;;  %v531_v21 = vmul.f32 0.01, %v414_v12 }
 0x103   :  { %2047 = vmatmul.msk.f32.gmra.mxu0 %vm284_vm0, %v90_v25  ;;  %1572 = vperm.xlu0 %2124, %v1522_v26   ;;  %v540_v46 = vmul.f32 0.01, %v441_v31  ;;  %vm508_vm2 = vcmp.gt.f32.partialorder %v441_v31, 0.0  ;;  %v565_v34 = vsel %vm501_vm9, %v420_v54, %v533_v15  ;;  %v405_v25 = vadd.f32 %v2480_v19, %v137_v22  ;;  %v1540_v19 = vld [vmem:[%s3229_s14 + $0xb0] sm:$0xff] }
 0x104   :  { %1562 = vperm.xlu2 %2126, %v1520_v28   ;;  %v564_v26 = vsel %vm500_vm10, %v417_v7, %v532_v18  ;;  %v127_v28 = vpop.permute.xlu0 %126  ;;  %v600_v54 = vld [vmem:[%s3230_s3 + $0x50] sm:$0xff] }
 0x105   :  { %v572_v53 = vsel %vm508_vm2, %v441_v31, %v540_v46  ;;  %v402_v31 = vadd.f32 %v2465_v14, %v132_v23  ;;  %v528_v37 = vmul.f32 0.01, %v405_v25  ;;  %vm496_vm14 = vcmp.gt.f32.partialorder %v405_v25, 0.0  ;;  %v1537_v46 = vld [vmem:[%s3229_s14 + $0x98] sm:$0xff]  ;;  %v604_v7 = vld [vmem:[%s3230_s3 + $0x70] sm:$0xff] }
 0x107   :  { %vm495_vm15 = vcmp.gt.f32.partialorder %v402_v31, 0.0  ;;  %v560_v14 = vsel %vm496_vm14, %v405_v25, %v528_v37 }
 0x108   :  { %v443_v33 = vpop.f32.mrf.mxu0 }
 0x109   :  { %v444_v38 = vadd.f32 %v443_v33, %v202_v4  ;;  %v569_v4 = vsel %vm505_vm5, %v432_v48, %v537_v62  ;;  %v529_v33 = vmul.f32 0.01, %v408_v20 }
 0x10a   :  { %1552 = vperm.xlu1 %2125, %v1518_v32   ;;  %v563_v32 = vsel %vm499_vm11, %v414_v12, %v531_v21  ;;  %v608_v12 = vld [vmem:[%s3230_s3 + $0x90] sm:$0xff] }
 0x10b   :  { %2048 = vmatmul.msk.f32.gmra.mxu0 %vm284_vm0, %v91_v35  ;;  %1557 = vperm.xlu0 %2124, %v1519_v36   ;;  %vm509_vm1 = vcmp.gt.f32.partialorder %v444_v38, 0.0  ;;  %v541_v45 = vmul.f32 0.01, %v444_v38  ;;  %v399_v35 = vadd.f32 %v2450_v9, %v127_v28  ;;  %v562_v36 = vsel %vm498_vm12, %v411_v16, %v530_v27  ;;  %v1539_v9 = vld [vmem:[%s3229_s14 + $0xa8] sm:$0xff]  ;;  %v267_v16 = vpop.permute.xlu1 %266  ;;  %v612_v21 = vld [vmem:[%s3230_s3 + $0xb0] sm:$0xff]  ;;  %v614_v28 = vld [vmem:[%s3230_s3 + $0xc0] sm:$0xff] }
 0x10c   :  { %1707 = vperm.xlu2 %2126, %v1549_v40   ;;  %v527_v40 = vmul.f32 0.01, %v402_v31 }
 0x10d   :  { %v573_v50 = vsel %vm509_vm1, %v444_v38, %v541_v45  ;;  %v561_v38 = vsel %vm497_vm13, %v408_v20, %v529_v33  ;;  %v526_v42 = vmul.f32 0.01, %v399_v35  ;;  %vm494_vm0 = vcmp.gt.f32.partialorder %v399_v35, 0.0 }
 0x10e   :  { %718 = vmatpush.msra.mxu1 %v573_v50  ;;  %v559_v45 = vsel %vm495_vm15, %v402_v31, %v527_v40  ;;  %v1535_v50 = vld [vmem:[%s3229_s14 + $0x88] sm:$0xff] }
 0x10f   :  { %v558_v48 = vsel %vm494_vm0, %v399_v35, %v526_v42 }
 0x110   :  { %v2681_v57 = vpop.f32.mrf.mxu0  ;;  %719 = vmatpush.msra.mxu1 %v572_v53  ;;  %v1534_v53 = vld [vmem:[%s3229_s14 + $0x80] sm:$0xff] }
 0x112   :  { %720 = vmatpush.msra.mxu1 %v571_v61  ;;  %1697 = vperm.xlu1 %2125, %v1547_v55   ;;  %v592_v55 = vld [vmem:[%s3230_s3 + $0x10] sm:$0xff] }
 0x113   :  { %1702 = vperm.xlu0 %2124, %v1548_v58   ;;  %v1929_v61 = vld [vmem:[%s3231_s16 + $0x10] sm:$0xff]  ;;  %v252_v22 = vpop.permute.xlu1 %251 }
 0x114   :  { %1692 = vperm.xlu2 %2126, %v1546_v59   ;;  %721 = vmatpush.msra.mxu1 %v570_v0  ;;  %v594_v59 = vld [vmem:[%s3230_s3 + $0x20] sm:$0xff]  ;;  %v596_v0 = vld [vmem:[%s3230_s3 + $0x30] sm:$0xff] }
 0x116   :  { %722 = vmatpush.msra.mxu1 %v569_v4 }
 0x118   :  { %v2696_v11 = vpop.f32.mrf.mxu0  ;;  %723 = vmatpush.msra.mxu1 %v568_v8 }
 0x11a   :  { %724 = vmatpush.msra.mxu1 %v567_v13  ;;  %1682 = vperm.xlu1 %2125, %v1544_v49   ;;  %v606_v49 = vld [vmem:[%s3230_s3 + $0x80] sm:$0xff]  ;;  %v277_v13 = vpop.permute.xlu2 %276 }
 0x11b   :  { %1687 = vperm.xlu0 %2124, %v1545_v44   ;;  %v237_v37 = vpop.permute.xlu1 %236 }
 0x11c   :  { %1677 = vperm.xlu2 %2126, %v1543_v39   ;;  %725 = vmatpush.msra.mxu1 %v566_v17  ;;  %v272_v39 = vpop.permute.xlu0 %271  ;;  %v610_v17 = vld [vmem:[%s3230_s3 + $0xa0] sm:$0xff] }
 0x11e   :  { %726 = vmatpush.msra.mxu1 %v565_v34 }
 0x120   :  { %v2711_v30 = vpop.f32.mrf.mxu0  ;;  %727 = vmatpush.msra.mxu1 %v564_v26 }
 0x122   :  { %728 = vmatpush.msra.mxu1 %v563_v32  ;;  %1667 = vperm.xlu1 %2125, %v1541_v29   ;;  %v262_v18 = vpop.permute.xlu2 %261 }
 0x123   :  { %1672 = vperm.xlu0 %2124, %v1542_v24  }
 0x124   :  { %1662 = vperm.xlu2 %2126, %v1540_v19   ;;  %729 = vmatpush.msra.mxu1 %v562_v36  ;;  %v257_v34 = vpop.permute.xlu0 %256 }
 0x126   :  { %730 = vmatpush.msra.mxu1 %v561_v38 }
 0x128   :  { %v2724_v43 = vpop.f32.mrf.mxu0  ;;  %731 = vmatpush.msra.mxu1 %v560_v14 }
 0x12a   :  { %732 = vmatpush.msra.mxu1 %v559_v45  ;;  %1652 = vperm.xlu1 %2125, %v1538_v41   ;;  %v247_v27 = vpop.permute.xlu2 %246  ;;  %v616_v45 = vld [vmem:[%s3230_s3 + $0xd0] sm:$0xff] }
 0x12b   :  { %1657 = vperm.xlu0 %2124, %v1539_v9  }
 0x12c   :  { %1647 = vperm.xlu2 %2126, %v1537_v46   ;;  %733 = vmatpush.msra.mxu1 %v558_v48  ;;  %v242_v19 = vpop.permute.xlu0 %241 }
 0x12d   :  { %734 = vmatmul.f32.vlgmr.msra.gmra.mxu1 %v590_v47 }
 0x130   :  { %v2738_v51 = vpop.f32.mrf.mxu0 }
 0x132   :  { %1637 = vperm.xlu1 %2125, %v1535_v50   ;;  %v232_v50 = vpop.permute.xlu2 %231 }
 0x133   :  { %1642 = vperm.xlu0 %2124, %v1536_v52  }
 0x134   :  { %1632 = vperm.xlu2 %2126, %v1534_v53  }
 0x135   :  { %737 = vmatmul.f32.gmra.mxu1 %v592_v55 }
 0x138   :  { %v2752_v58 = vpop.f32.mrf.mxu0 }
 0x13a   :  { %1938 = vperm.xlu1 %2125, %v1928_v56   ;;  %v227_v56 = vpop.permute.xlu0 %226 }
 0x13b   :  { %1933 = vperm.xlu0 %2124, %v1927_v60  }
 0x13c   :  { %1943 = vperm.xlu2 %2126, %v1929_v61  }
 0x13d   :  { %740 = vmatmul.f32.gmra.mxu1 %v594_v59 }
 0x140   :  { %v2763_v62 = vpop.f32.mrf.mxu0 }
 0x141   :  { %v465_v60 = vadd.f32 %v2763_v62, %v237_v37  ;;  %v459_v62 = vadd.f32 %v2738_v51, %v227_v56 }
 0x143   :  { %1948 = vperm.xlu0 %2124, %v1930_v63   ;;  %v222_v63 = vpop.permute.xlu1 %221  ;;  %vm516_vm10 = vcmp.gt.f32.partialorder %v465_v60, 0.0  ;;  %vm514_vm12 = vcmp.gt.f32.partialorder %v459_v62, 0.0 }
 0x145   :  { %743 = vmatmul.f32.gmra.mxu1 %v596_v0  ;;  %v462_v0 = vadd.f32 %v2752_v58, %v232_v50  ;;  %v456_v58 = vadd.f32 %v2724_v43, %v222_v63 }
 0x147   :  { %vm515_vm11 = vcmp.gt.f32.partialorder %v462_v0, 0.0  ;;  %v545_v43 = vmul.f32 0.01, %v456_v58  ;;  %vm513_vm13 = vcmp.gt.f32.partialorder %v456_v58, 0.0 }
 0x148   :  { %v2771_v1 = vpop.f32.mrf.mxu0 }
 0x149   :  { %v468_v52 = vadd.f32 %v2771_v1, %v242_v19  ;;  %v613_v19 = vld [vmem:[%s3230_s3 + $0xb8] sm:$0xff] }
 0x14b   :  { %v549_v1 = vmul.f32 0.01, %v468_v52  ;;  %vm517_vm9 = vcmp.gt.f32.partialorder %v468_v52, 0.0 }
 0x14d   :  { %746 = vmatmul.f32.gmra.mxu1 %v598_v2 }
 0x150   :  { %v2776_v3 = vpop.f32.mrf.mxu0 }
 0x151   :  { %v471_v46 = vadd.f32 %v2776_v3, %v247_v27  ;;  %v618_v3 = vld [vmem:[%s3230_s3 + $0xe0] sm:$0xff]  ;;  %v595_v27 = vld [vmem:[%s3230_s3 + $0x28] sm:$0xff] }
 0x153   :  { %v550_v61 = vmul.f32 0.01, %v471_v46  ;;  %vm518_vm8 = vcmp.gt.f32.partialorder %v471_v46, 0.0 }
 0x155   :  { %749 = vmatmul.f32.gmra.mxu1 %v600_v54  ;;  %v548_v54 = vmul.f32 0.01, %v465_v60 }
 0x157   :  { %v580_v51 = vsel %vm516_vm10, %v465_v60, %v548_v54 }
 0x158   :  { %v473_v4 = vpop.f32.mrf.mxu0 }
 0x159   :  { %v474_v41 = vadd.f32 %v473_v4, %v252_v22  ;;  %v582_v4 = vsel %vm518_vm8, %v471_v46, %v550_v61  ;;  %v599_v22 = vld [vmem:[%s3230_s3 + $0x48] sm:$0xff] }
 0x15b   :  { %v551_v53 = vmul.f32 0.01, %v474_v41  ;;  %vm519_vm7 = vcmp.gt.f32.partialorder %v474_v41, 0.0 }
 0x15d   :  { %752 = vmatmul.f32.gmra.mxu1 %v602_v5  ;;  %v583_v2 = vsel %vm519_vm7, %v474_v41, %v551_v53  ;;  %v547_v5 = vmul.f32 0.01, %v462_v0 }
 0x160   :  { %v476_v6 = vpop.f32.mrf.mxu0 }
 0x161   :  { %v477_v38 = vadd.f32 %v476_v6, %v257_v34  ;;  %v581_v6 = vsel %vm517_vm9, %v468_v52, %v549_v1  ;;  %v591_v34 = vld [vmem:[%s3230_s3 + $0x8] sm:$0xff] }
 0x163   :  { %v552_v47 = vmul.f32 0.01, %v477_v38  ;;  %vm520_vm6 = vcmp.gt.f32.partialorder %v477_v38, 0.0 }
 0x165   :  { %755 = vmatmul.f32.gmra.mxu1 %v604_v7  ;;  %v584_v59 = vsel %vm520_vm6, %v477_v38, %v552_v47  ;;  %v217_v7 = vpop.permute.xlu2 %216  ;;  %v619_v38 = vld [vmem:[%s3230_s3 + $0xe8] sm:$0xff] }
 0x168   :  { %v479_v8 = vpop.f32.mrf.mxu0 }
 0x169   :  { %v480_v33 = vadd.f32 %v479_v8, %v262_v18  ;;  %v453_v8 = vadd.f32 %v2711_v30, %v217_v7 }
 0x16b   :  { %v553_v42 = vmul.f32 0.01, %v480_v33  ;;  %vm521_vm5 = vcmp.gt.f32.partialorder %v480_v33, 0.0  ;;  %vm512_vm14 = vcmp.gt.f32.partialorder %v453_v8, 0.0 }
 0x16d   :  { %758 = vmatmul.f32.gmra.mxu1 %v606_v49  ;;  %v585_v55 = vsel %vm521_vm5, %v480_v33, %v553_v42  ;;  %v546_v49 = vmul.f32 0.01, %v459_v62  ;;  %v615_v33 = vld [vmem:[%s3230_s3 + $0xc8] sm:$0xff] }
 0x170   :  { %v482_v44 = vpop.f32.mrf.mxu0 }
 0x171   :  { %v483_v24 = vadd.f32 %v482_v44, %v267_v16  ;;  %v578_v16 = vsel %vm514_vm12, %v459_v62, %v546_v49 }
 0x173   :  { %v554_v40 = vmul.f32 0.01, %v483_v24  ;;  %vm522_vm4 = vcmp.gt.f32.partialorder %v483_v24, 0.0 }
 0x175   :  { %761 = vmatmul.f32.gmra.mxu1 %v608_v12  ;;  %v586_v48 = vsel %vm522_vm4, %v483_v24, %v554_v40  ;;  %v579_v12 = vsel %vm515_vm11, %v462_v0, %v547_v5  ;;  %v611_v24 = vld [vmem:[%s3230_s3 + $0xa8] sm:$0xff] }
 0x178   :  { %v485_v15 = vpop.f32.mrf.mxu0 }
 0x179   :  { %v486_v26 = vadd.f32 %v485_v15, %v272_v39  ;;  %v620_v39 = vld [vmem:[%s3230_s3 + $0xf0] sm:$0xff]  ;;  %v544_v15 = vmul.f32 0.01, %v453_v8 }
 0x17b   :  { %v555_v35 = vmul.f32 0.01, %v486_v26  ;;  %vm523_vm3 = vcmp.gt.f32.partialorder %v486_v26, 0.0 }
 0x17d   :  { %764 = vmatmul.f32.gmra.mxu1 %v610_v17  ;;  %v587_v9 = vsel %vm523_vm3, %v486_v26, %v555_v35  ;;  %v577_v17 = vsel %vm513_vm13, %v456_v58, %v545_v43  ;;  %v601_v26 = vld [vmem:[%s3230_s3 + $0x58] sm:$0xff] }
 0x180   :  { %v488_v20 = vpop.f32.mrf.mxu0 }
 0x181   :  { %v489_v23 = vadd.f32 %v488_v20, %v277_v13  ;;  %v207_v13 = vpop.permute.xlu1 %206  ;;  %v576_v20 = vsel %vm512_vm14, %v453_v8, %v544_v15 }
 0x182   :  { %v447_v30 = vadd.f32 %v2681_v57, %v207_v13 }
 0x183   :  { %v556_v31 = vmul.f32 0.01, %v489_v23  ;;  %vm524_vm2 = vcmp.gt.f32.partialorder %v489_v23, 0.0 }
 0x184   :  { %v542_v18 = vmul.f32 0.01, %v447_v30  ;;  %vm510_vm0 = vcmp.gt.f32.partialorder %v447_v30, 0.0 }
 0x185   :  { %767 = vmatmul.f32.gmra.mxu1 %v612_v21  ;;  %v588_v14 = vsel %vm524_vm2, %v489_v23, %v556_v31  ;;  %v607_v23 = vld [vmem:[%s3230_s3 + $0x88] sm:$0xff]  ;;  %v597_v31 = vld [vmem:[%s3230_s3 + $0x38] sm:$0xff] }
 0x186   :  { %v574_v21 = vsel %vm510_vm0, %v447_v30, %v542_v18 }
 0x188   :  { %v491_v25 = vpop.f32.mrf.mxu0 }
 0x189   :  { %v492_v29 = vadd.f32 %v491_v25, %v282_v10  ;;  %v212_v10 = vpop.permute.xlu0 %211  ;;  %v593_v25 = vld [vmem:[%s3230_s3 + $0x18] sm:$0xff] }
 0x18a   :  { %v450_v44 = vadd.f32 %v2696_v11, %v212_v10 }
 0x18b   :  { %v557_v32 = vmul.f32 0.01, %v492_v29  ;;  %vm525_vm1 = vcmp.gt.f32.partialorder %v492_v29, 0.0 }
 0x18c   :  { %v543_v11 = vmul.f32 0.01, %v450_v44  ;;  %vm511_vm15 = vcmp.gt.f32.partialorder %v450_v44, 0.0 }
 0x18d   :  { %770 = vmatmul.f32.gmra.mxu1 %v614_v28  ;;  %v589_v36 = vsel %vm525_vm1, %v492_v29, %v557_v32  ;;  %v609_v29 = vld [vmem:[%s3230_s3 + $0x98] sm:$0xff]  ;;  %v603_v28 = vld [vmem:[%s3230_s3 + $0x68] sm:$0xff] }
 0x18e   :  { %783 = vmatpush.msrb.mxu0 %v589_v36  ;;  %2075 = vmatpush.msra.mxu2 %v589_v36  ;;  %v575_v57 = vsel %vm511_vm15, %v450_v44, %v543_v11  ;;  %v605_v32 = vld [vmem:[%s3230_s3 + $0x78] sm:$0xff] }
 0x18f   :  { %2076 = vmatpush.msra.mxu3 %v589_v36  ;;  %v617_v36 = vld [vmem:[%s3230_s3 + $0xd8] sm:$0xff] }
 0x190   :  { %784 = vmatpush.msrb.mxu0 %v588_v14  ;;  %2077 = vmatpush.msra.mxu2 %v588_v14 }
 0x191   :  { %2078 = vmatpush.msra.mxu3 %v588_v14  ;;  %v621_v14 = vld [vmem:[%s3230_s3 + $0xf8] sm:$0xff]  ;;  %v711_v1 = vpop.permute.xlu0 %710 }
 0x192   :  { %785 = vmatpush.msrb.mxu0 %v587_v9  ;;  %2079 = vmatpush.msra.mxu2 %v587_v9 }
 0x193   :  { %2080 = vmatpush.msra.mxu3 %v587_v9 }
 0x194   :  { %786 = vmatpush.msrb.mxu0 %v586_v48  ;;  %2081 = vmatpush.msra.mxu2 %v586_v48 }
 0x195   :  { %2082 = vmatpush.msra.mxu3 %v586_v48  ;;  %773 = vmatmul.f32.gmra.mxu1 %v616_v45 }
 0x196   :  { %787 = vmatpush.msrb.mxu0 %v585_v55  ;;  %2083 = vmatpush.msra.mxu2 %v585_v55 }
 0x197   :  { %2084 = vmatpush.msra.mxu3 %v585_v55 }
 0x198   :  { %788 = vmatpush.msrb.mxu0 %v584_v59  ;;  %2085 = vmatpush.msra.mxu2 %v584_v59 }
 0x199   :  { %2086 = vmatpush.msra.mxu3 %v584_v59  ;;  %v716_v59 = vpop.permute.xlu2 %715  ;;  %v696_v5 = vpop.permute.xlu0 %695 }
 0x19a   :  { %789 = vmatpush.msrb.mxu0 %v583_v2  ;;  %2087 = vmatpush.msra.mxu2 %v583_v2 }
 0x19b   :  { %2088 = vmatpush.msra.mxu3 %v583_v2 }
 0x19c   :  { %790 = vmatpush.msrb.mxu0 %v582_v4  ;;  %2089 = vmatpush.msra.mxu2 %v582_v4 }
 0x19d   :  { %2090 = vmatpush.msra.mxu3 %v582_v4  ;;  %776 = vmatmul.f32.gmra.mxu1 %v618_v3  ;;  %v706_v3 = vpop.permute.xlu1 %705 }
 0x19e   :  { %791 = vmatpush.msrb.mxu0 %v581_v6  ;;  %2091 = vmatpush.msra.mxu2 %v581_v6 }
 0x19f   :  { %2092 = vmatpush.msra.mxu3 %v581_v6 }
 0x1a0   :  { %792 = vmatpush.msrb.mxu0 %v580_v51  ;;  %2093 = vmatpush.msra.mxu2 %v580_v51 }
 0x1a1   :  { %2094 = vmatpush.msra.mxu3 %v580_v51  ;;  %v701_v62 = vpop.permute.xlu2 %700  ;;  %v681_v43 = vpop.permute.xlu0 %680 }
 0x1a2   :  { %793 = vmatpush.msrb.mxu0 %v579_v12  ;;  %2095 = vmatpush.msra.mxu2 %v579_v12 }
 0x1a3   :  { %2096 = vmatpush.msra.mxu3 %v579_v12 }
 0x1a4   :  { %794 = vmatpush.msrb.mxu0 %v578_v16  ;;  %2097 = vmatpush.msra.mxu2 %v578_v16 }
 0x1a5   :  { %2098 = vmatpush.msra.mxu3 %v578_v16  ;;  %779 = vmatmul.f32.gmra.mxu1 %v620_v39  ;;  %v691_v7 = vpop.permute.xlu1 %690 }
 0x1a6   :  { %795 = vmatpush.msrb.mxu0 %v577_v17  ;;  %2099 = vmatpush.msra.mxu2 %v577_v17 }
 0x1a7   :  { %2100 = vmatpush.msra.mxu3 %v577_v17 }
 0x1a8   :  { %796 = vmatpush.msrb.mxu0 %v576_v20  ;;  %2101 = vmatpush.msra.mxu2 %v576_v20 }
 0x1a9   :  { %2102 = vmatpush.msra.mxu3 %v576_v20  ;;  %v686_v49 = vpop.permute.xlu2 %685 }
 0x1aa   :  { %797 = vmatpush.msrb.mxu0 %v575_v57  ;;  %2103 = vmatpush.msra.mxu2 %v575_v57  ;;  %v2859_v35 = vpop.f32.mrf.mxu1 }
 0x1ab   :  { %2104 = vmatpush.msra.mxu3 %v575_v57 }
 0x1ac   :  { %798 = vmatpush.msrb.mxu0 %v574_v21  ;;  %2105 = vmatpush.msra.mxu2 %v574_v21 }
 0x1ad   :  { %2106 = vmatpush.msra.mxu3 %v574_v21  ;;  %799 = vmatmul.f32.vlgmr.msrb.gmra.mxu0 %v591_v34  ;;  %v676_v18 = vpop.permute.xlu1 %675 }
 0x1ae   :  { %811 = vmatmul.f32.vlgmr.msra.gmra.mxu2 %v599_v22  ;;  %823 = vmatmul.f32.vlgmr.msra.gmra.mxu3 %v607_v23 }
 0x1b1   :  { %v671_v22 = vpop.permute.xlu2 %670 }
 0x1b2   :  { %v2864_v37 = vpop.f32.mrf.mxu1 }
 0x1b5   :  { %802 = vmatmul.f32.gmra.mxu0 %v593_v25 }
 0x1b6   :  { %814 = vmatmul.f32.gmra.mxu2 %v601_v26  ;;  %826 = vmatmul.f32.gmra.mxu3 %v609_v29 }
 0x1ba   :  { %v2869_v40 = vpop.f32.mrf.mxu1 }
 0x1bd   :  { %805 = vmatmul.f32.gmra.mxu0 %v595_v27 }
 0x1be   :  { %817 = vmatmul.f32.gmra.mxu2 %v603_v28  ;;  %829 = vmatmul.f32.gmra.mxu3 %v611_v24 }
 0x1c2   :  { %v2874_v41 = vpop.f32.mrf.mxu1 }
 0x1c5   :  { %808 = vmatmul.f32.gmra.mxu0 %v597_v31 }
 0x1c6   :  { %820 = vmatmul.f32.gmra.mxu2 %v605_v32  ;;  %832 = vmatmul.f32.gmra.mxu3 %v613_v19 }
 0x1ca   :  { %v2876_v42 = vpop.f32.mrf.mxu1 }
 0x1ce   :  { %835 = vmatmul.f32.gmra.mxu3 %v615_v33 }
 0x1d2   :  { %v2878_v9 = vpop.f32.mrf.mxu1 }
 0x1d6   :  { %838 = vmatmul.f32.gmra.mxu3 %v617_v36 }
 0x1da   :  { %v2880_v45 = vpop.f32.mrf.mxu1 }
 0x1de   :  { %841 = vmatmul.f32.gmra.mxu3 %v619_v38 }
 0x1e2   :  { %v2882_v46 = vpop.f32.mrf.mxu1 }
 0x1e6   :  { %844 = vmatmul.f32.gmra.mxu3 %v621_v14  ;;  %v666_v14 = vpop.permute.xlu0 %665 }
 0x1ea   :  { %v759_v47 = vpop.f32.mrf.mxu1 }
 0x1eb   :  { %v760_v19 = vadd.f32 %v759_v47, %v681_v43 }
 0x1f2   :  { %v762_v48 = vpop.f32.mrf.mxu1 }
 0x1f3   :  { %v763_v27 = vadd.f32 %v762_v48, %v686_v49 }
 0x1fa   :  { %v765_v52 = vpop.f32.mrf.mxu1 }
 0x1fb   :  { %v766_v23 = vadd.f32 %v765_v52, %v691_v7  ;;  %v757_v52 = vadd.f32 %v2882_v46, %v676_v18 }
 0x202   :  { %v768_v55 = vpop.f32.mrf.mxu1 }
 0x203   :  { %v769_v20 = vadd.f32 %v768_v55, %v696_v5 }
 0x20a   :  { %v771_v60 = vpop.f32.mrf.mxu1 }
 0x20b   :  { %v772_v16 = vadd.f32 %v771_v60, %v701_v62 }
 0x212   :  { %v774_v63 = vpop.f32.mrf.mxu1 }
 0x213   :  { %v775_v12 = vadd.f32 %v774_v63, %v706_v3 }
 0x21a   :  { %v777_v4 = vpop.f32.mrf.mxu1 }
 0x21b   :  { %v778_v10 = vadd.f32 %v777_v4, %v711_v1  ;;  %v751_v1 = vadd.f32 %v2878_v9, %v666_v14 }
 0x222   :  { %v780_v51 = vpop.f32.mrf.mxu1 }
 0x223   :  { %v781_v13 = vadd.f32 %v780_v51, %v716_v59  ;;  %v754_v59 = vadd.f32 %v2880_v45, %v671_v22  ;;  %v651_v51 = vpop.permute.xlu0 %650 }
 0x22a   :  { %v2888_v58 = vpop.f32.mrf.mxu0 }
 0x231   :  { %v2884_v50 = vpop.f32.mrf.mxu3  ;;  %v2886_v2 = vpop.f32.mrf.mxu2 }
 0x232   :  { %v2892_v44 = vpop.f32.mrf.mxu0  ;;  %v825_v60 = vadd.f32 %v2884_v50, %v760_v19 }
 0x234   :  { %v872_v46 = vmul.f32 0.01, %v825_v60  ;;  %vm856_vm8 = vcmp.gt.f32.partialorder %v825_v60, 0.0 }
 0x236   :  { %v888_v49 = vsel %vm856_vm8, %v825_v60, %v872_v46 }
 0x239   :  { %v827_v53 = vpop.f32.mrf.mxu3  ;;  %v2890_v6 = vpop.f32.mrf.mxu2 }
 0x23a   :  { %v806_v32 = vpop.f32.mrf.mxu0  ;;  %v828_v33 = vadd.f32 %v827_v53, %v763_v27  ;;  %v902_v27 = vld [vmem:[%s3232_s5 + $0x30] sm:$0xff] }
 0x23c   :  { %v873_v53 = vmul.f32 0.01, %v828_v33  ;;  %vm857_vm7 = vcmp.gt.f32.partialorder %v828_v33, 0.0 }
 0x23e   :  { %v889_v4 = vsel %vm857_vm7, %v828_v33, %v873_v53 }
 0x241   :  { %v830_v56 = vpop.f32.mrf.mxu3  ;;  %v818_v30 = vpop.f32.mrf.mxu2 }
 0x242   :  { %v831_v28 = vadd.f32 %v830_v56, %v766_v23  ;;  %v661_v56 = vpop.permute.xlu1 %660  ;;  %v819_v3 = vadd.f32 %v818_v30, %v754_v59  ;;  %v809_v45 = vpop.f32.mrf.mxu0  ;;  %v898_v23 = vld [vmem:[%s3232_s5 + $0x10] sm:$0xff] }
 0x243   :  { %v748_v50 = vadd.f32 %v2876_v42, %v661_v56 }
 0x244   :  { %v874_v48 = vmul.f32 0.01, %v831_v28  ;;  %vm858_vm6 = vcmp.gt.f32.partialorder %v831_v28, 0.0  ;;  %v870_v9 = vmul.f32 0.01, %v819_v3  ;;  %vm854_vm10 = vcmp.gt.f32.partialorder %v819_v3, 0.0 }
 0x246   :  { %v890_v62 = vsel %vm858_vm6, %v831_v28, %v874_v48  ;;  %v886_v30 = vsel %vm854_vm10, %v819_v3, %v870_v9  ;;  %v903_v28 = vld [vmem:[%s3232_s5 + $0x38] sm:$0xff] }
 0x249   :  { %v833_v61 = vpop.f32.mrf.mxu3  ;;  %v821_v55 = vpop.f32.mrf.mxu2 }
 0x24a   :  { %v834_v25 = vadd.f32 %v833_v61, %v769_v20  ;;  %v822_v63 = vadd.f32 %v821_v55, %v757_v52 }
 0x24c   :  { %v875_v38 = vmul.f32 0.01, %v834_v25  ;;  %vm859_vm5 = vcmp.gt.f32.partialorder %v834_v25, 0.0  ;;  %v871_v5 = vmul.f32 0.01, %v822_v63  ;;  %vm855_vm9 = vcmp.gt.f32.partialorder %v822_v63, 0.0 }
 0x24e   :  { %v891_v47 = vsel %vm859_vm5, %v834_v25, %v875_v38  ;;  %v887_v42 = vsel %vm855_vm9, %v822_v63, %v871_v5  ;;  %v899_v25 = vld [vmem:[%s3232_s5 + $0x18] sm:$0xff]  ;;  %v950_v38 = vpop.permute.xlu0 %949  ;;  %vm1031_vm9 = vcmask 523264  }
 0x251   :  { %v836_v0 = vpop.f32.mrf.mxu3 }
 0x252   :  { %v837_v57 = vadd.f32 %v836_v0, %v772_v16  ;;  %v656_v0 = vpop.permute.xlu2 %655 }
 0x253   :  { %v745_v7 = vadd.f32 %v2874_v41, %v656_v0 }
 0x254   :  { %v876_v31 = vmul.f32 0.01, %v837_v57  ;;  %vm860_vm4 = vcmp.gt.f32.partialorder %v837_v57, 0.0 }
 0x255   :  { %v810_v43 = vadd.f32 %v809_v45, %v745_v7 }
 0x256   :  { %v892_v61 = vsel %vm860_vm4, %v837_v57, %v876_v31  ;;  %v935_v60 = vpop.permute.xlu0 %934 }
 0x257   :  { %vm851_vm13 = vcmp.gt.f32.partialorder %v810_v43, 0.0 }
 0x259   :  { %v839_v54 = vpop.f32.mrf.mxu3 }
 0x25a   :  { %v840_v11 = vadd.f32 %v839_v54, %v775_v12  ;;  %v816_v54 = vadd.f32 %v2890_v6, %v751_v1  ;;  %v646_v6 = vpop.permute.xlu1 %645 }
 0x25c   :  { %v877_v29 = vmul.f32 0.01, %v840_v11  ;;  %vm861_vm3 = vcmp.gt.f32.partialorder %v840_v11, 0.0  ;;  %v869_v12 = vmul.f32 0.01, %v816_v54  ;;  %vm853_vm11 = vcmp.gt.f32.partialorder %v816_v54, 0.0 }
 0x25e   :  { %v893_v36 = vsel %vm861_vm3, %v840_v11, %v877_v29  ;;  %v885_v11 = vsel %vm853_vm11, %v816_v54, %v869_v12  ;;  %v901_v29 = vld [vmem:[%s3232_s5 + $0x28] sm:$0xff]  ;;  %v920_v5 = vpop.permute.xlu0 %919 }
 0x261   :  { %v842_v8 = vpop.f32.mrf.mxu3 }
 0x262   :  { %v843_v39 = vadd.f32 %v842_v8, %v778_v10  ;;  %v813_v8 = vadd.f32 %v2886_v2, %v748_v50  ;;  %v742_v10 = vadd.f32 %v2869_v40, %v651_v51  ;;  %v867_v40 = vmul.f32 0.01, %v810_v43  ;;  %v945_v14 = vpop.permute.xlu1 %944 }
 0x264   :  { %v878_v21 = vmul.f32 0.01, %v843_v39  ;;  %vm862_vm2 = vcmp.gt.f32.partialorder %v843_v39, 0.0  ;;  %v868_v41 = vmul.f32 0.01, %v813_v8  ;;  %vm852_vm12 = vcmp.gt.f32.partialorder %v813_v8, 0.0 }
 0x266   :  { %v894_v24 = vsel %vm862_vm2, %v843_v39, %v878_v21  ;;  %v807_v39 = vadd.f32 %v806_v32, %v742_v10  ;;  %v884_v18 = vsel %vm852_vm12, %v813_v8, %v868_v41  ;;  %v1018_v41 = vld [vmem:[%s3233_s7 + $0x8] sm:$0xff]  ;;  %vm1123_vm12 = vcmask 130048  }
 0x268   :  { %v866_v20 = vmul.f32 0.01, %v807_v39  ;;  %vm850_vm14 = vcmp.gt.f32.partialorder %v807_v39, 0.0 }
 0x269   :  { %v845_v15 = vpop.f32.mrf.mxu3 }
 0x26a   :  { %v846_v17 = vadd.f32 %v845_v15, %v781_v13  ;;  %v739_v13 = vadd.f32 %v2864_v37, %v646_v6  ;;  %v641_v15 = vpop.permute.xlu2 %640  ;;  %v883_v37 = vsel %vm851_vm13, %v810_v43, %v867_v40  ;;  %v930_v48 = vpop.permute.xlu1 %929 }
 0x26b   :  { %v736_v2 = vadd.f32 %v2859_v35, %v641_v15 }
 0x26c   :  { %vm863_vm1 = vcmp.gt.f32.partialorder %v846_v17, 0.0  ;;  %v879_v34 = vmul.f32 0.01, %v846_v17  ;;  %v804_v16 = vadd.f32 %v2892_v44, %v739_v13  ;;  %v896_v44 = vld [vmem:[%s3232_s5] sm:$0xff] }
 0x26e   :  { %v895_v26 = vsel %vm863_vm1, %v846_v17, %v879_v34  ;;  %v801_v17 = vadd.f32 %v2888_v58, %v736_v2  ;;  %v865_v57 = vmul.f32 0.01, %v804_v16  ;;  %vm849_vm15 = vcmp.gt.f32.partialorder %v804_v16, 0.0  ;;  %v897_v58 = vld [vmem:[%s3232_s5 + $0x8] sm:$0xff]  ;;  %v1024_v2 = vpop.permute.xlu0 %1023 }
 0x26f   :  { %952 = vmatpush.msrb.mxu3 %v895_v26  ;;  %v882_v34 = vsel %vm850_vm14, %v807_v39, %v866_v20  ;;  %v900_v26 = vld [vmem:[%s3232_s5 + $0x20] sm:$0xff] }
 0x270   :  { %v864_v21 = vmul.f32 0.01, %v801_v17  ;;  %vm848_vm0 = vcmp.gt.f32.partialorder %v801_v17, 0.0  ;;  %v881_v35 = vsel %vm849_vm15, %v804_v16, %v865_v57  ;;  %v1017_v39 = vld [vmem:[%s3233_s7] sm:$0xff] }
 0x271   :  { %953 = vmatpush.msrb.mxu3 %v894_v24  ;;  %v1067_v57 = vld [vmem:[%s3234_s9] sm:$0xff] }
 0x272   :  { %v880_v22 = vsel %vm848_vm0, %v801_v17, %v864_v21  ;;  %v940_v52 = vpop.permute.xlu2 %939  ;;  %v1068_v21 = vld [vmem:[%s3234_s9 + $0x8] sm:$0xff] }
 0x273   :  { %954 = vmatpush.msrb.mxu3 %v893_v36 }
 0x275   :  { %955 = vmatpush.msrb.mxu3 %v892_v61 }
 0x277   :  { %956 = vmatpush.msrb.mxu3 %v891_v47 }
 0x279   :  { %957 = vmatpush.msrb.mxu3 %v890_v62 }
 0x27a   :  { %v925_v46 = vpop.permute.xlu2 %924 }
 0x27b   :  { %958 = vmatpush.msrb.mxu3 %v889_v4 }
 0x27d   :  { %959 = vmatpush.msrb.mxu3 %v888_v49  ;;  %v915_v49 = vpop.permute.xlu1 %914 }
 0x27f   :  { %960 = vmatpush.msrb.mxu3 %v887_v42 }
 0x281   :  { %961 = vmatpush.msrb.mxu3 %v886_v30 }
 0x283   :  { %962 = vmatpush.msrb.mxu3 %v885_v11  ;;  %v1029_v11 = vpop.permute.xlu2 %1028 }
 0x285   :  { %963 = vmatpush.msrb.mxu3 %v884_v18 }
 0x287   :  { %964 = vmatpush.msrb.mxu3 %v883_v37 }
 0x289   :  { %965 = vmatpush.msrb.mxu3 %v882_v34 }
 0x28b   :  { %966 = vmatpush.msrb.mxu3 %v881_v35  ;;  %v1069_v35 = vld [vmem:[%s3234_s9 + $0x10] sm:$0xff] }
 0x28d   :  { %967 = vmatpush.msrb.mxu3 %v880_v22  ;;  %v1071_v22 = vld [vmem:[%s3234_s9 + $0x20] sm:$0xff] }
 0x28e   :  { %968 = vmatmul.f32.vlgmr.msrb.gmra.mxu3 %v896_v44  ;;  %v1070_v44 = vld [vmem:[%s3234_s9 + $0x18] sm:$0xff] }
 0x296   :  { %971 = vmatmul.f32.gmra.mxu3 %v897_v58  ;;  %v1072_v58 = vld [vmem:[%s3234_s9 + $0x28] sm:$0xff] }
 0x29e   :  { %974 = vmatmul.f32.gmra.mxu3 %v898_v23  ;;  %v1073_v23 = vld [vmem:[%s3234_s9 + $0x30] sm:$0xff] }
 0x2a6   :  { %977 = vmatmul.f32.gmra.mxu3 %v899_v25  ;;  %v1074_v25 = vld [vmem:[%s3234_s9 + $0x38] sm:$0xff] }
 0x2ae   :  { %980 = vmatmul.f32.gmra.mxu3 %v900_v26 }
 0x2b6   :  { %983 = vmatmul.f32.gmra.mxu3 %v901_v29 }
 0x2be   :  { %986 = vmatmul.f32.gmra.mxu3 %v902_v27 }
 0x2c6   :  { %989 = vmatmul.f32.gmra.mxu3 %v903_v28 }
 0x311   :  { %v969_v24 = vpop.f32.mrf.mxu3 }
 0x312   :  { %v970_v9 = vadd.f32 %v969_v24, %v915_v49 }
 0x314   :  { %v1001_v6 = vmul.f32 0.01, %v970_v9  ;;  %vm993_vm8 = vcmp.gt.f32.partialorder %v970_v9, 0.0 }
 0x316   :  { %v1009_v30 = vsel %vm993_vm8, %v970_v9, %v1001_v6  ;;  %v1214_v6 = vld [vmem:[%s3235_s11 + $0x8] sm:$0xff] }
 0x319   :  { %v972_v31 = vpop.f32.mrf.mxu3 }
 0x31a   :  { %v973_v45 = vadd.f32 %v972_v31, %v920_v5 }
 0x31c   :  { %v1002_v42 = vmul.f32 0.01, %v973_v45  ;;  %vm994_vm7 = vcmp.gt.f32.partialorder %v973_v45, 0.0 }
 0x31e   :  { %v1010_v13 = vsel %vm994_vm7, %v973_v45, %v1002_v42  ;;  %v1213_v42 = vld [vmem:[%s3235_s11] sm:$0xff] }
 0x321   :  { %v975_v32 = vpop.f32.mrf.mxu3 }
 0x322   :  { %v976_v50 = vadd.f32 %v975_v32, %v925_v46  ;;  %v1121_v32 = vpop.permute.xlu1 %1120 }
 0x324   :  { %v1003_v51 = vmul.f32 0.01, %v976_v50  ;;  %vm995_vm6 = vcmp.gt.f32.partialorder %v976_v50, 0.0 }
 0x326   :  { %v1011_v12 = vsel %vm995_vm6, %v976_v50, %v1003_v51 }
 0x329   :  { %v978_v19 = vpop.f32.mrf.mxu3 }
 0x32a   :  { %v979_v1 = vadd.f32 %v978_v19, %v930_v48  ;;  %v1116_v19 = vpop.permute.xlu2 %1115 }
 0x32c   :  { %v1004_v7 = vmul.f32 0.01, %v979_v1  ;;  %vm996_vm5 = vcmp.gt.f32.partialorder %v979_v1, 0.0 }
 0x32e   :  { %v1012_v43 = vsel %vm996_vm5, %v979_v1, %v1004_v7 }
 0x331   :  { %v981_v33 = vpop.f32.mrf.mxu3 }
 0x332   :  { %v982_v47 = vadd.f32 %v981_v33, %v935_v60 }
 0x334   :  { %v1005_v54 = vmul.f32 0.01, %v982_v47  ;;  %vm997_vm4 = vcmp.gt.f32.partialorder %v982_v47, 0.0 }
 0x336   :  { %v1013_v10 = vsel %vm997_vm4, %v982_v47, %v1005_v54 }
 0x339   :  { %v984_v36 = vpop.f32.mrf.mxu3 }
 0x33a   :  { %v985_v59 = vadd.f32 %v984_v36, %v940_v52  ;;  %v1111_v36 = vpop.permute.xlu0 %1110 }
 0x33c   :  { %v1006_v3 = vmul.f32 0.01, %v985_v59  ;;  %vm998_vm3 = vcmp.gt.f32.partialorder %v985_v59, 0.0 }
 0x33e   :  { %v1014_v8 = vsel %vm998_vm3, %v985_v59, %v1006_v3 }
 0x341   :  { %v987_v55 = vpop.f32.mrf.mxu3 }
 0x342   :  { %v988_v61 = vadd.f32 %v987_v55, %v945_v14  ;;  %v1101_v55 = vpop.permute.xlu2 %1100 }
 0x344   :  { %v1007_v53 = vmul.f32 0.01, %v988_v61  ;;  %vm999_vm2 = vcmp.gt.f32.partialorder %v988_v61, 0.0 }
 0x346   :  { %v1015_v4 = vsel %vm999_vm2, %v988_v61, %v1007_v53 }
 0x349   :  { %v990_v56 = vpop.f32.mrf.mxu3 }
 0x34a   :  { %v991_v63 = vadd.f32 %v990_v56, %v950_v38  ;;  %v1106_v38 = vpop.permute.xlu1 %1105  ;;  %v1086_v5 = vpop.permute.xlu2 %1085 }
 0x34c   :  { %vm1000_vm1 = vcmp.gt.f32.partialorder %v991_v63, 0.0  ;;  %v1008_v0 = vmul.f32 0.01, %v991_v63 }
 0x34e   :  { %v1016_v62 = vsel %vm1000_vm1, %v991_v63, %v1008_v0  ;;  %v1096_v0 = vpop.permute.xlu0 %1095 }
 0x34f   :  { %1046 = vmatpush.msra.mxu3 %v1016_v62 }
 0x351   :  { %1047 = vmatpush.msra.mxu3 %v1015_v4 }
 0x352   :  { %v1091_v46 = vpop.permute.xlu1 %1090 }
 0x353   :  { %1048 = vmatpush.msra.mxu3 %v1014_v8 }
 0x355   :  { %1049 = vmatpush.msra.mxu3 %v1013_v10 }
 0x357   :  { %1050 = vmatpush.msra.mxu3 %v1012_v43 }
 0x359   :  { %1051 = vmatpush.msra.mxu3 %v1011_v12 }
 0x35b   :  { %1052 = vmatpush.msra.mxu3 %v1010_v13  ;;  %v1215_v13 = vld [vmem:[%s3235_s11 + $0x10] sm:$0xff] }
 0x35d   :  { %1053 = vmatpush.msra.mxu3 %v1009_v30  ;;  %v1217_v30 = vld [vmem:[%s3235_s11 + $0x20] sm:$0xff] }
 0x35e   :  { %2049 = vmatmul.msk.f32.vlgmr.msra.gmra.mxu3 %vm1031_vm9, %v1017_v39  ;;  %v1216_v39 = vld [vmem:[%s3235_s11 + $0x18] sm:$0xff] }
 0x366   :  { %2050 = vmatmul.msk.f32.gmra.mxu3 %vm1031_vm9, %v1018_v41  ;;  %v1218_v41 = vld [vmem:[%s3235_s11 + $0x28] sm:$0xff] }
 0x3e1   :  { %v1055_v15 = vpop.f32.mrf.mxu3 }
 0x3e2   :  { %v1056_v16 = vadd.f32 %v1055_v15, %v1024_v2  ;;  %v1219_v15 = vld [vmem:[%s3235_s11 + $0x30] sm:$0xff]  ;;  %v1220_v2 = vld [vmem:[%s3235_s11 + $0x38] sm:$0xff] }
 0x3e4   :  { %v1063_v18 = vmul.f32 0.01, %v1056_v16  ;;  %vm1061_vm11 = vcmp.gt.f32.partialorder %v1056_v16, 0.0 }
 0x3e6   :  { %v1065_v34 = vsel %vm1061_vm11, %v1056_v16, %v1063_v18  ;;  %v1221_v16 = vld [vmem:[%s3235_s11 + $0x40] sm:$0xff] }
 0x3e7   :  { %v1225_v18 = vld [vmem:[%s3235_s11 + $0x60] sm:$0xff] }
 0x3e9   :  { %v1058_v40 = vpop.f32.mrf.mxu3 }
 0x3ea   :  { %v1059_v17 = vadd.f32 %v1058_v40, %v1029_v11  ;;  %v1222_v11 = vld [vmem:[%s3235_s11 + $0x48] sm:$0xff]  ;;  %v1223_v40 = vld [vmem:[%s3235_s11 + $0x50] sm:$0xff] }
 0x3ec   :  { %vm1062_vm10 = vcmp.gt.f32.partialorder %v1059_v17, 0.0  ;;  %v1064_v20 = vmul.f32 0.01, %v1059_v17 }
 0x3ee   :  { %v1066_v37 = vsel %vm1062_vm10, %v1059_v17, %v1064_v20  ;;  %v1224_v17 = vld [vmem:[%s3235_s11 + $0x58] sm:$0xff]  ;;  %v1226_v20 = vld [vmem:[%s3235_s11 + $0x68] sm:$0xff] }
 0x3ef   :  { %1162 = vmatpush.msrb.mxu3 %v1066_v37  ;;  %v1227_v37 = vld [vmem:[%s3235_s11 + $0x70] sm:$0xff] }
 0x3f1   :  { %1163 = vmatpush.msrb.mxu3 %v1065_v34 }
 0x3f2   :  { %2051 = vmatmul.msk.f32.vlgmr.msrb.gmra.mxu3 %vm1123_vm12, %v1067_v57  ;;  %v1228_v57 = vld [vmem:[%s3235_s11 + $0x78] sm:$0xff] }
 0x3fa   :  { %2052 = vmatmul.msk.f32.gmra.mxu3 %vm1123_vm12, %v1068_v21 }
 0x402   :  { %2053 = vmatmul.msk.f32.gmra.mxu3 %vm1123_vm12, %v1069_v35 }
 0x40a   :  { %2054 = vmatmul.msk.f32.gmra.mxu3 %vm1123_vm12, %v1070_v44 }
 0x412   :  { %2055 = vmatmul.msk.f32.gmra.mxu3 %vm1123_vm12, %v1071_v22 }
 0x41a   :  { %2056 = vmatmul.msk.f32.gmra.mxu3 %vm1123_vm12, %v1072_v58 }
 0x422   :  { %2057 = vmatmul.msk.f32.gmra.mxu3 %vm1123_vm12, %v1073_v23 }
 0x42a   :  { %2058 = vmatmul.msk.f32.gmra.mxu3 %vm1123_vm12, %v1074_v25 }
 0x475   :  { %v1165_v26 = vpop.f32.mrf.mxu3 }
 0x476   :  { %v1166_v45 = vadd.f32 %v1165_v26, %v1086_v5 }
 0x478   :  { %v1197_v10 = vmul.f32 0.01, %v1166_v45  ;;  %vm1189_vm4 = vcmp.gt.f32.partialorder %v1166_v45, 0.0 }
 0x47a   :  { %v1205_v12 = vsel %vm1189_vm4, %v1166_v45, %v1197_v10 }
 0x47d   :  { %v1168_v29 = vpop.f32.mrf.mxu3 }
 0x47e   :  { %v1169_v50 = vadd.f32 %v1168_v29, %v1091_v46 }
 0x480   :  { %v1198_v9 = vmul.f32 0.01, %v1169_v50  ;;  %vm1190_vm3 = vcmp.gt.f32.partialorder %v1169_v50, 0.0 }
 0x482   :  { %v1206_v43 = vsel %vm1190_vm3, %v1169_v50, %v1198_v9 }
 0x485   :  { %v1171_v27 = vpop.f32.mrf.mxu3 }
 0x486   :  { %v1172_v1 = vadd.f32 %v1171_v27, %v1096_v0 }
 0x488   :  { %v1199_v8 = vmul.f32 0.01, %v1172_v1  ;;  %vm1191_vm2 = vcmp.gt.f32.partialorder %v1172_v1, 0.0 }
 0x48a   :  { %v1207_v51 = vsel %vm1191_vm2, %v1172_v1, %v1199_v8 }
 0x48d   :  { %v1174_v28 = vpop.f32.mrf.mxu3 }
 0x48e   :  { %v1175_v63 = vadd.f32 %v1174_v28, %v1101_v55 }
 0x490   :  { %v1200_v4 = vmul.f32 0.01, %v1175_v63  ;;  %vm1192_vm1 = vcmp.gt.f32.partialorder %v1175_v63, 0.0 }
 0x492   :  { %v1208_v49 = vsel %vm1192_vm1, %v1175_v63, %v1200_v4 }
 0x495   :  { %v1177_v24 = vpop.f32.mrf.mxu3 }
 0x496   :  { %v1178_v48 = vadd.f32 %v1177_v24, %v1106_v38  ;;  %v1323_v24 = vpop.permute.xlu0 %1322 }
 0x498   :  { %v1201_v62 = vmul.f32 0.01, %v1178_v48  ;;  %vm1193_vm0 = vcmp.gt.f32.partialorder %v1178_v48, 0.0 }
 0x49a   :  { %v1209_v7 = vsel %vm1193_vm0, %v1178_v48, %v1201_v62 }
 0x49d   :  { %v1180_v31 = vpop.f32.mrf.mxu3 }
 0x49e   :  { %v1181_v60 = vadd.f32 %v1180_v31, %v1111_v36  ;;  %v1308_v36 = vpop.permute.xlu0 %1307 }
 0x4a0   :  { %v1202_v53 = vmul.f32 0.01, %v1181_v60  ;;  %vm1194_vm15 = vcmp.gt.f32.partialorder %v1181_v60, 0.0 }
 0x4a2   :  { %v1210_v54 = vsel %vm1194_vm15, %v1181_v60, %v1202_v53 }
 0x4a5   :  { %v1183_v33 = vpop.f32.mrf.mxu3 }
 0x4a6   :  { %v1184_v14 = vadd.f32 %v1183_v33, %v1116_v19  ;;  %v1313_v19 = vpop.permute.xlu2 %1312 }
 0x4a8   :  { %v1203_v59 = vmul.f32 0.01, %v1184_v14  ;;  %vm1195_vm14 = vcmp.gt.f32.partialorder %v1184_v14, 0.0 }
 0x4aa   :  { %v1211_v3 = vsel %vm1195_vm14, %v1184_v14, %v1203_v59 }
 0x4ad   :  { %v1186_v52 = vpop.f32.mrf.mxu3 }
 0x4ae   :  { %v1187_v61 = vadd.f32 %v1186_v52, %v1121_v32  ;;  %v1318_v32 = vpop.permute.xlu1 %1317  ;;  %v1298_v55 = vpop.permute.xlu2 %1297 }
 0x4af   :  { %v1293_v52 = vpop.permute.xlu0 %1292 }
 0x4b0   :  { %vm1196_vm13 = vcmp.gt.f32.partialorder %v1187_v61, 0.0  ;;  %v1204_v56 = vmul.f32 0.01, %v1187_v61 }
 0x4b2   :  { %v1212_v47 = vsel %vm1196_vm13, %v1187_v61, %v1204_v56 }
 0x4b3   :  { %1381 = vmatpush.msrb.mxu1 %v1212_v47 }
 0x4b5   :  { %1382 = vmatpush.msrb.mxu1 %v1211_v3 }
 0x4b6   :  { %v1303_v38 = vpop.permute.xlu1 %1302  ;;  %v1283_v0 = vpop.permute.xlu2 %1282 }
 0x4b7   :  { %1383 = vmatpush.msrb.mxu1 %v1210_v54  ;;  %v1278_v46 = vpop.permute.xlu0 %1277 }
 0x4b9   :  { %1384 = vmatpush.msrb.mxu1 %v1209_v7 }
 0x4bb   :  { %1385 = vmatpush.msrb.mxu1 %v1208_v49 }
 0x4bd   :  { %1386 = vmatpush.msrb.mxu1 %v1207_v51 }
 0x4be   :  { %v1288_v59 = vpop.permute.xlu1 %1287 }
 0x4bf   :  { %1387 = vmatpush.msrb.mxu1 %v1206_v43 }
 0x4c1   :  { %1388 = vmatpush.msrb.mxu1 %v1205_v12  ;;  %v1268_v12 = vpop.permute.xlu2 %1267 }
 0x4c2   :  { %2059 = vmatmul.msk.f32.vlgmr.msrb.gmra.mxu1 %vm1031_vm9, %v1213_v42 }
 0x4c6   :  { %v1273_v51 = vpop.permute.xlu1 %1272 }
 0x4ca   :  { %2060 = vmatmul.msk.f32.gmra.mxu1 %vm1031_vm9, %v1214_v6 }
 0x4d2   :  { %2061 = vmatmul.msk.f32.gmra.mxu1 %vm1031_vm9, %v1215_v13 }
 0x4da   :  { %2062 = vmatmul.msk.f32.gmra.mxu1 %vm1031_vm9, %v1216_v39 }
 0x4e2   :  { %2063 = vmatmul.msk.f32.gmra.mxu1 %vm1031_vm9, %v1217_v30  ;;  %v1263_v30 = vpop.permute.xlu0 %1262 }
 0x4ea   :  { %2064 = vmatmul.msk.f32.gmra.mxu1 %vm1031_vm9, %v1218_v41 }
 0x4f2   :  { %2065 = vmatmul.msk.f32.gmra.mxu1 %vm1031_vm9, %v1219_v15 }
 0x4fa   :  { %2066 = vmatmul.msk.f32.gmra.mxu1 %vm1031_vm9, %v1220_v2 }
 0x502   :  { %2067 = vmatmul.msk.f32.gmra.mxu1 %vm1031_vm9, %v1221_v16 }
 0x50a   :  { %2068 = vmatmul.msk.f32.gmra.mxu1 %vm1031_vm9, %v1222_v11 }
 0x512   :  { %2069 = vmatmul.msk.f32.gmra.mxu1 %vm1031_vm9, %v1223_v40 }
 0x51a   :  { %2070 = vmatmul.msk.f32.gmra.mxu1 %vm1031_vm9, %v1224_v17 }
 0x522   :  { %2071 = vmatmul.msk.f32.gmra.mxu1 %vm1031_vm9, %v1225_v18 }
 0x52a   :  { %2072 = vmatmul.msk.f32.gmra.mxu1 %vm1031_vm9, %v1226_v20 }
 0x532   :  { %2073 = vmatmul.msk.f32.gmra.mxu1 %vm1031_vm9, %v1227_v37  ;;  %v1258_v37 = vpop.permute.xlu1 %1257 }
 0x53a   :  { %2074 = vmatmul.msk.f32.gmra.mxu1 %vm1031_vm9, %v1228_v57 }
 0x53f   :  { %v3035_v34 = vpop.f32.mrf.mxu1 }
 0x547   :  { %v3037_v21 = vpop.f32.mrf.mxu1 }
 0x54f   :  { %v3039_v35 = vpop.f32.mrf.mxu1 }
 0x550   :  { %v1397_v57 = vadd.f32 %v3039_v35, %v1258_v37  ;;  %v1516_v37 = vld [vmem:[%s3236_s13 + $0xf0] sm:$0xff] }
 0x552   :  { %vm1440_vm2 = vcmp.gt.f32.partialorder %v1397_v57, 0.0 }
 0x557   :  { %v3041_v44 = vpop.f32.mrf.mxu1 }
 0x558   :  { %v1400_v17 = vadd.f32 %v3041_v44, %v1263_v30  ;;  %v1513_v30 = vld [vmem:[%s3236_s13 + $0xd8] sm:$0xff] }
 0x55a   :  { %vm1441_vm1 = vcmp.gt.f32.partialorder %v1400_v17, 0.0 }
 0x55f   :  { %v3043_v22 = vpop.f32.mrf.mxu1 }
 0x560   :  { %v1403_v16 = vadd.f32 %v3043_v22, %v1268_v12  ;;  %v1511_v12 = vld [vmem:[%s3236_s13 + $0xc8] sm:$0xff] }
 0x562   :  { %vm1442_vm0 = vcmp.gt.f32.partialorder %v1403_v16, 0.0 }
 0x567   :  { %v3045_v58 = vpop.f32.mrf.mxu1 }
 0x568   :  { %v1406_v41 = vadd.f32 %v3045_v58, %v1273_v51  ;;  %v1458_v58 = vmul.f32 0.01, %v1403_v16  ;;  %v1509_v51 = vld [vmem:[%s3236_s13 + $0xb8] sm:$0xff] }
 0x56a   :  { %v1459_v18 = vmul.f32 0.01, %v1406_v41  ;;  %vm1443_vm15 = vcmp.gt.f32.partialorder %v1406_v41, 0.0 }
 0x56f   :  { %v1408_v23 = vpop.f32.mrf.mxu1 }
 0x570   :  { %v1409_v6 = vadd.f32 %v1408_v23, %v1278_v46  ;;  %v1504_v46 = vld [vmem:[%s3236_s13 + $0x90] sm:$0xff] }
 0x572   :  { %v1460_v11 = vmul.f32 0.01, %v1409_v6  ;;  %vm1444_vm14 = vcmp.gt.f32.partialorder %v1409_v6, 0.0 }
 0x574   :  { %v1476_v23 = vsel %vm1444_vm14, %v1409_v6, %v1460_v11  ;;  %v1515_v11 = vld [vmem:[%s3236_s13 + $0xe8] sm:$0xff] }
 0x577   :  { %v1411_v25 = vpop.f32.mrf.mxu1 }
 0x578   :  { %v1412_v10 = vadd.f32 %v1411_v25, %v1283_v0  ;;  %v1253_v25 = vpop.permute.xlu2 %1252  ;;  %v1500_v0 = vld [vmem:[%s3236_s13 + $0x70] sm:$0xff] }
 0x579   :  { %v1394_v22 = vadd.f32 %v3037_v21, %v1253_v25  ;;  %v1517_v25 = vld [vmem:[%s3236_s13 + $0xf8] sm:$0xff] }
 0x57a   :  { %v1461_v15 = vmul.f32 0.01, %v1412_v10  ;;  %vm1445_vm13 = vcmp.gt.f32.partialorder %v1412_v10, 0.0 }
 0x57b   :  { %v1455_v35 = vmul.f32 0.01, %v1394_v22  ;;  %vm1439_vm3 = vcmp.gt.f32.partialorder %v1394_v22, 0.0 }
 0x57c   :  { %v1477_v20 = vsel %vm1445_vm13, %v1412_v10, %v1461_v15  ;;  %v1514_v15 = vld [vmem:[%s3236_s13 + $0xe0] sm:$0xff] }
 0x57f   :  { %v1414_v26 = vpop.f32.mrf.mxu1 }
 0x580   :  { %v1415_v8 = vadd.f32 %v1414_v26, %v1288_v59  ;;  %v1457_v26 = vmul.f32 0.01, %v1400_v17  ;;  %v1496_v59 = vld [vmem:[%s3236_s13 + $0x50] sm:$0xff] }
 0x582   :  { %v1462_v13 = vmul.f32 0.01, %v1415_v8  ;;  %vm1446_vm12 = vcmp.gt.f32.partialorder %v1415_v8, 0.0 }
 0x584   :  { %v1478_v40 = vsel %vm1446_vm12, %v1415_v8, %v1462_v13  ;;  %v1512_v13 = vld [vmem:[%s3236_s13 + $0xd0] sm:$0xff] }
 0x587   :  { %v1417_v29 = vpop.f32.mrf.mxu1 }
 0x588   :  { %v1418_v5 = vadd.f32 %v1417_v29, %v1293_v52  ;;  %v1475_v29 = vsel %vm1443_vm15, %v1406_v41, %v1459_v18  ;;  %v1491_v52 = vld [vmem:[%s3236_s13 + $0x28] sm:$0xff] }
 0x58a   :  { %v1463_v43 = vmul.f32 0.01, %v1418_v5  ;;  %vm1447_vm11 = vcmp.gt.f32.partialorder %v1418_v5, 0.0 }
 0x58c   :  { %v1479_v2 = vsel %vm1447_vm11, %v1418_v5, %v1463_v43  ;;  %v1506_v5 = vld [vmem:[%s3236_s13 + $0xa0] sm:$0xff] }
 0x58d   :  { %v1510_v43 = vld [vmem:[%s3236_s13 + $0xc0] sm:$0xff] }
 0x58f   :  { %v1420_v27 = vpop.f32.mrf.mxu1 }
 0x590   :  { %v1421_v50 = vadd.f32 %v1420_v27, %v1298_v55  ;;  %v1248_v27 = vpop.permute.xlu0 %1247  ;;  %v1490_v55 = vld [vmem:[%s3236_s13 + $0x20] sm:$0xff] }
 0x591   :  { %v1391_v44 = vadd.f32 %v3035_v34, %v1248_v27  ;;  %v1486_v34 = vld [vmem:[%s3236_s13] sm:$0xff] }
 0x592   :  { %v1464_v49 = vmul.f32 0.01, %v1421_v50  ;;  %vm1448_vm10 = vcmp.gt.f32.partialorder %v1421_v50, 0.0 }
 0x593   :  { %vm1438_vm4 = vcmp.gt.f32.partialorder %v1391_v44, 0.0 }
 0x594   :  { %v1480_v39 = vsel %vm1448_vm10, %v1421_v50, %v1464_v49  ;;  %v1508_v49 = vld [vmem:[%s3236_s13 + $0xb0] sm:$0xff] }
 0x597   :  { %v1423_v28 = vpop.f32.mrf.mxu1 }
 0x598   :  { %v1424_v1 = vadd.f32 %v1423_v28, %v1303_v38  ;;  %v1456_v28 = vmul.f32 0.01, %v1397_v57  ;;  %v1487_v38 = vld [vmem:[%s3236_s13 + $0x8] sm:$0xff] }
 0x59a   :  { %v1465_v45 = vmul.f32 0.01, %v1424_v1  ;;  %vm1449_vm9 = vcmp.gt.f32.partialorder %v1424_v1, 0.0  ;;  %v1472_v21 = vsel %vm1440_vm2, %v1397_v57, %v1456_v28 }
 0x59c   :  { %v1481_v42 = vsel %vm1449_vm9, %v1424_v1, %v1465_v45  ;;  %v1501_v1 = vld [vmem:[%s3236_s13 + $0x78] sm:$0xff] }
 0x59f   :  { %v1426_v31 = vpop.f32.mrf.mxu1 }
 0x5a0   :  { %v1427_v63 = vadd.f32 %v1426_v31, %v1308_v36  ;;  %v1473_v31 = vsel %vm1441_vm1, %v1400_v17, %v1457_v26  ;;  %v1618_v17 = vpop.permute.xlu0 %1617 }
 0x5a2   :  { %v1466_v54 = vmul.f32 0.01, %v1427_v63  ;;  %vm1450_vm8 = vcmp.gt.f32.partialorder %v1427_v63, 0.0 }
 0x5a4   :  { %v1482_v9 = vsel %vm1450_vm8, %v1427_v63, %v1466_v54  ;;  %v1497_v63 = vld [vmem:[%s3236_s13 + $0x58] sm:$0xff] }
 0x5a5   :  { %v1505_v54 = vld [vmem:[%s3236_s13 + $0x98] sm:$0xff] }
 0x5a7   :  { %v1429_v33 = vpop.f32.mrf.mxu1 }
 0x5a8   :  { %v1430_v48 = vadd.f32 %v1429_v33, %v1313_v19  ;;  %v1471_v19 = vsel %vm1439_vm3, %v1394_v22, %v1455_v35  ;;  %v1488_v33 = vld [vmem:[%s3236_s13 + $0x10] sm:$0xff] }
 0x5aa   :  { %v1467_v3 = vmul.f32 0.01, %v1430_v48  ;;  %vm1451_vm7 = vcmp.gt.f32.partialorder %v1430_v48, 0.0 }
 0x5ac   :  { %v1483_v7 = vsel %vm1451_vm7, %v1430_v48, %v1467_v3  ;;  %v1494_v48 = vld [vmem:[%s3236_s13 + $0x40] sm:$0xff] }
 0x5ad   :  { %v1502_v3 = vld [vmem:[%s3236_s13 + $0x80] sm:$0xff] }
 0x5af   :  { %v1432_v14 = vpop.f32.mrf.mxu1 }
 0x5b0   :  { %v1433_v60 = vadd.f32 %v1432_v14, %v1318_v32  ;;  %v1454_v32 = vmul.f32 0.01, %v1391_v44  ;;  %v1489_v14 = vld [vmem:[%s3236_s13 + $0x18] sm:$0xff] }
 0x5b2   :  { %v1468_v47 = vmul.f32 0.01, %v1433_v60  ;;  %vm1452_vm6 = vcmp.gt.f32.partialorder %v1433_v60, 0.0  ;;  %v1470_v36 = vsel %vm1438_vm4, %v1391_v44, %v1454_v32 }
 0x5b4   :  { %v1484_v4 = vsel %vm1452_vm6, %v1433_v60, %v1468_v47  ;;  %v1492_v60 = vld [vmem:[%s3236_s13 + $0x30] sm:$0xff]  ;;  %v1498_v47 = vld [vmem:[%s3236_s13 + $0x60] sm:$0xff] }
 0x5b7   :  { %v1435_v61 = vpop.f32.mrf.mxu1 }
 0x5b8   :  { %v1436_v56 = vadd.f32 %v1435_v61, %v1323_v24  ;;  %v1474_v24 = vsel %vm1442_vm0, %v1403_v16, %v1458_v58  ;;  %v1493_v61 = vld [vmem:[%s3236_s13 + $0x38] sm:$0xff] }
 0x5ba   :  { %vm1453_vm5 = vcmp.gt.f32.partialorder %v1436_v56, 0.0  ;;  %v1469_v53 = vmul.f32 0.01, %v1436_v56 }
 0x5bc   :  { %v1485_v62 = vsel %vm1453_vm5, %v1436_v56, %v1469_v53  ;;  %v1495_v56 = vld [vmem:[%s3236_s13 + $0x48] sm:$0xff] }
 0x5bd   :  { %1710 = vmatpush.msra.mxu1 %v1485_v62  ;;  %2107 = vmatpush.msrb.mxu2 %v1485_v62  ;;  %v1499_v53 = vld [vmem:[%s3236_s13 + $0x68] sm:$0xff] }
 0x5be   :  { %v1503_v62 = vld [vmem:[%s3236_s13 + $0x88] sm:$0xff] }
 0x5bf   :  { %1711 = vmatpush.msra.mxu1 %v1484_v4  ;;  %2108 = vmatpush.msrb.mxu2 %v1484_v4 }
 0x5c1   :  { %1712 = vmatpush.msra.mxu1 %v1483_v7  ;;  %2109 = vmatpush.msrb.mxu2 %v1483_v7  ;;  %v1507_v7 = vld [vmem:[%s3236_s13 + $0xa8] sm:$0xff] }
 0x5c3   :  { %1713 = vmatpush.msra.mxu1 %v1482_v9  ;;  %2110 = vmatpush.msrb.mxu2 %v1482_v9 }
 0x5c5   :  { %1714 = vmatpush.msra.mxu1 %v1481_v42  ;;  %2111 = vmatpush.msrb.mxu2 %v1481_v42 }
 0x5c7   :  { %1715 = vmatpush.msra.mxu1 %v1480_v39  ;;  %2112 = vmatpush.msrb.mxu2 %v1480_v39 }
 0x5c9   :  { %1716 = vmatpush.msra.mxu1 %v1479_v2  ;;  %2113 = vmatpush.msrb.mxu2 %v1479_v2  ;;  %v1628_v2 = vpop.permute.xlu1 %1627 }
 0x5cb   :  { %1717 = vmatpush.msra.mxu1 %v1478_v40  ;;  %2114 = vmatpush.msrb.mxu2 %v1478_v40  ;;  %v1623_v40 = vpop.permute.xlu2 %1622 }
 0x5cd   :  { %1718 = vmatpush.msra.mxu1 %v1477_v20  ;;  %2115 = vmatpush.msrb.mxu2 %v1477_v20 }
 0x5cf   :  { %1719 = vmatpush.msra.mxu1 %v1476_v23  ;;  %2116 = vmatpush.msrb.mxu2 %v1476_v23  ;;  %v1603_v23 = vpop.permute.xlu0 %1602 }
 0x5d1   :  { %1720 = vmatpush.msra.mxu1 %v1475_v29  ;;  %2117 = vmatpush.msrb.mxu2 %v1475_v29  ;;  %v1613_v20 = vpop.permute.xlu1 %1612 }
 0x5d3   :  { %1721 = vmatpush.msra.mxu1 %v1474_v24  ;;  %2118 = vmatpush.msrb.mxu2 %v1474_v24  ;;  %v1608_v57 = vpop.permute.xlu2 %1607 }
 0x5d5   :  { %1722 = vmatpush.msra.mxu1 %v1473_v31  ;;  %2119 = vmatpush.msrb.mxu2 %v1473_v31 }
 0x5d7   :  { %1723 = vmatpush.msra.mxu1 %v1472_v21  ;;  %2120 = vmatpush.msrb.mxu2 %v1472_v21  ;;  %v1588_v32 = vpop.permute.xlu0 %1587 }
 0x5d9   :  { %1724 = vmatpush.msra.mxu1 %v1471_v19  ;;  %2121 = vmatpush.msrb.mxu2 %v1471_v19  ;;  %v1598_v22 = vpop.permute.xlu1 %1597 }
 0x5db   :  { %1725 = vmatpush.msra.mxu1 %v1470_v36  ;;  %2122 = vmatpush.msrb.mxu2 %v1470_v36  ;;  %v1593_v28 = vpop.permute.xlu2 %1592 }
 0x5dc   :  { %1726 = vmatmul.f32.vlgmr.msra.gmra.mxu1 %v1486_v34  ;;  %1732 = vmatmul.f32.vlgmr.msrb.gmra.mxu2 %v1488_v33 }
 0x5e1   :  { %v1583_v33 = vpop.permute.xlu1 %1582 }
 0x5e4   :  { %1729 = vmatmul.f32.gmra.mxu1 %v1487_v38  ;;  %1735 = vmatmul.f32.gmra.mxu2 %v1489_v14 }
 0x5ec   :  { %1738 = vmatmul.f32.gmra.mxu2 %v1490_v55 }
 0x5f4   :  { %1741 = vmatmul.f32.gmra.mxu2 %v1491_v52 }
 0x5fc   :  { %1744 = vmatmul.f32.gmra.mxu2 %v1492_v60 }
 0x604   :  { %1747 = vmatmul.f32.gmra.mxu2 %v1493_v61 }
 0x60c   :  { %1750 = vmatmul.f32.gmra.mxu2 %v1494_v48 }
 0x614   :  { %1753 = vmatmul.f32.gmra.mxu2 %v1495_v56 }
 0x61c   :  { %1756 = vmatmul.f32.gmra.mxu2 %v1496_v59 }
 0x624   :  { %1759 = vmatmul.f32.gmra.mxu2 %v1497_v63  ;;  %v1578_v63 = vpop.permute.xlu2 %1577 }
 0x62c   :  { %1762 = vmatmul.f32.gmra.mxu2 %v1498_v47 }
 0x634   :  { %1765 = vmatmul.f32.gmra.mxu2 %v1499_v53 }
 0x63c   :  { %1768 = vmatmul.f32.gmra.mxu2 %v1500_v0 }
 0x644   :  { %1771 = vmatmul.f32.gmra.mxu2 %v1501_v1 }
 0x64c   :  { %1774 = vmatmul.f32.gmra.mxu2 %v1502_v3  ;;  %v1573_v3 = vpop.permute.xlu0 %1572 }
 0x654   :  { %1777 = vmatmul.f32.gmra.mxu2 %v1503_v62 }
 0x659   :  { %v1727_v47 = vpop.f32.mrf.mxu1 }
 0x65c   :  { %1780 = vmatmul.f32.gmra.mxu2 %v1504_v46 }
 0x65f   :  { %v3110_v50 = vpop.f32.mrf.mxu2 }
 0x664   :  { %1783 = vmatmul.f32.gmra.mxu2 %v1505_v54 }
 0x667   :  { %v3115_v4 = vpop.f32.mrf.mxu2 }
 0x66c   :  { %1786 = vmatmul.f32.gmra.mxu2 %v1506_v5  ;;  %v1568_v5 = vpop.permute.xlu1 %1567 }
 0x66f   :  { %v3120_v45 = vpop.f32.mrf.mxu2 }
 0x674   :  { %1789 = vmatmul.f32.gmra.mxu2 %v1507_v7 }
 0x677   :  { %v3125_v8 = vpop.f32.mrf.mxu2 }
 0x67c   :  { %1792 = vmatmul.f32.gmra.mxu2 %v1508_v49  ;;  %v1743_v49 = vadd.f32 %v3125_v8, %v1578_v63 }
 0x67e   :  { %vm1828_vm15 = vcmp.gt.f32.partialorder %v1743_v49, 0.0 }
 0x67f   :  { %v3130_v9 = vpop.f32.mrf.mxu2 }
 0x680   :  { %v1746_v62 = vadd.f32 %v3130_v9, %v1583_v33  ;;  %v1737_v9 = vadd.f32 %v3115_v4, %v1568_v5 }
 0x682   :  { %vm1829_vm14 = vcmp.gt.f32.partialorder %v1746_v62, 0.0  ;;  %vm1826_vm1 = vcmp.gt.f32.partialorder %v1737_v9, 0.0 }
 0x684   :  { %1795 = vmatmul.f32.gmra.mxu2 %v1509_v51 }
 0x687   :  { %v3135_v10 = vpop.f32.mrf.mxu2 }
 0x688   :  { %v1749_v53 = vadd.f32 %v3135_v10, %v1588_v32  ;;  %v1740_v10 = vadd.f32 %v3120_v45, %v1573_v3 }
 0x68a   :  { %vm1830_vm13 = vcmp.gt.f32.partialorder %v1749_v53, 0.0  ;;  %vm1827_vm0 = vcmp.gt.f32.partialorder %v1740_v10, 0.0 }
 0x68c   :  { %1798 = vmatmul.f32.gmra.mxu2 %v1510_v43  ;;  %v1862_v43 = vmul.f32 0.01, %v1749_v53 }
 0x68f   :  { %v1751_v42 = vpop.f32.mrf.mxu2 }
 0x690   :  { %v1752_v48 = vadd.f32 %v1751_v42, %v1593_v28  ;;  %v1923_v28 = vld [vmem:[%s3237_s15 + $0x20] sm:$0xff] }
 0x692   :  { %v1863_v46 = vmul.f32 0.01, %v1752_v48  ;;  %vm1831_vm12 = vcmp.gt.f32.partialorder %v1752_v48, 0.0 }
 0x694   :  { %1801 = vmatmul.f32.gmra.mxu2 %v1511_v12  ;;  %v1895_v42 = vsel %vm1831_vm12, %v1752_v48, %v1863_v46  ;;  %v1861_v12 = vmul.f32 0.01, %v1746_v62 }
 0x697   :  { %v1754_v6 = vpop.f32.mrf.mxu2 }
 0x698   :  { %v1755_v52 = vadd.f32 %v1754_v6, %v1598_v22  ;;  %v1894_v6 = vsel %vm1830_vm13, %v1749_v53, %v1862_v43  ;;  %v1919_v22 = vld [vmem:[%s3237_s15] sm:$0xff] }
 0x69a   :  { %v1864_v0 = vmul.f32 0.01, %v1755_v52  ;;  %vm1832_vm11 = vcmp.gt.f32.partialorder %v1755_v52, 0.0 }
 0x69c   :  { %1804 = vmatmul.f32.gmra.mxu2 %v1512_v13  ;;  %v1896_v51 = vsel %vm1832_vm11, %v1755_v52, %v1864_v0  ;;  %v1860_v13 = vmul.f32 0.01, %v1743_v49 }
 0x69f   :  { %v1757_v39 = vpop.f32.mrf.mxu2 }
 0x6a0   :  { %v1758_v36 = vadd.f32 %v1757_v39, %v1603_v23  ;;  %v1563_v39 = vpop.permute.xlu2 %1562 }
 0x6a1   :  { %v1734_v8 = vadd.f32 %v3110_v50, %v1563_v39 }
 0x6a2   :  { %v1865_v56 = vmul.f32 0.01, %v1758_v36  ;;  %vm1833_vm10 = vcmp.gt.f32.partialorder %v1758_v36, 0.0 }
 0x6a3   :  { %vm1825_vm2 = vcmp.gt.f32.partialorder %v1734_v8, 0.0 }
 0x6a4   :  { %1807 = vmatmul.f32.gmra.mxu2 %v1513_v30  ;;  %v1897_v54 = vsel %vm1833_vm10, %v1758_v36, %v1865_v56  ;;  %v1730_v30 = vpop.f32.mrf.mxu1 }
 0x6a7   :  { %v1760_v41 = vpop.f32.mrf.mxu2 }
 0x6a8   :  { %v1761_v21 = vadd.f32 %v1760_v41, %v1608_v57  ;;  %v1893_v41 = vsel %vm1829_vm14, %v1746_v62, %v1861_v12  ;;  %v1708_v33 = vpop.permute.xlu2 %1707 }
 0x6aa   :  { %v1866_v60 = vmul.f32 0.01, %v1761_v21  ;;  %vm1834_vm9 = vcmp.gt.f32.partialorder %v1761_v21, 0.0 }
 0x6ac   :  { %1810 = vmatmul.f32.gmra.mxu2 %v1514_v15  ;;  %v1898_v1 = vsel %vm1834_vm9, %v1761_v21, %v1866_v60  ;;  %v1859_v15 = vmul.f32 0.01, %v1740_v10 }
 0x6af   :  { %v1763_v16 = vpop.f32.mrf.mxu2 }
 0x6b0   :  { %v1764_v24 = vadd.f32 %v1763_v16, %v1613_v20  ;;  %v1857_v20 = vmul.f32 0.01, %v1734_v8  ;;  %v1693_v60 = vpop.permute.xlu2 %1692 }
 0x6b2   :  { %v1867_v38 = vmul.f32 0.01, %v1764_v24  ;;  %vm1835_vm8 = vcmp.gt.f32.partialorder %v1764_v24, 0.0 }
 0x6b4   :  { %1813 = vmatmul.f32.gmra.mxu2 %v1515_v11  ;;  %v1899_v59 = vsel %vm1835_vm8, %v1764_v24, %v1867_v38  ;;  %v1892_v11 = vsel %vm1828_vm15, %v1743_v49, %v1860_v13 }
 0x6b7   :  { %v1766_v18 = vpop.f32.mrf.mxu2 }
 0x6b8   :  { %v1767_v27 = vadd.f32 %v1766_v18, %v1618_v17  ;;  %v1553_v17 = vpop.permute.xlu1 %1552  ;;  %v1891_v18 = vsel %vm1827_vm0, %v1740_v10, %v1859_v15 }
 0x6b9   :  { %v1728_v4 = vadd.f32 %v1727_v47, %v1553_v17 }
 0x6ba   :  { %v1868_v19 = vmul.f32 0.01, %v1767_v27  ;;  %vm1836_vm7 = vcmp.gt.f32.partialorder %v1767_v27, 0.0 }
 0x6bb   :  { %v1855_v57 = vmul.f32 0.01, %v1728_v4  ;;  %vm1823_vm4 = vcmp.gt.f32.partialorder %v1728_v4, 0.0 }
 0x6bc   :  { %1816 = vmatmul.f32.gmra.mxu2 %v1516_v37  ;;  %v1900_v61 = vsel %vm1836_vm7, %v1767_v27, %v1868_v19  ;;  %v1921_v27 = vld [vmem:[%s3237_s15 + $0x10] sm:$0xff] }
 0x6bf   :  { %v1769_v58 = vpop.f32.mrf.mxu2 }
 0x6c0   :  { %v1770_v26 = vadd.f32 %v1769_v58, %v1623_v40  ;;  %v1858_v40 = vmul.f32 0.01, %v1737_v9  ;;  %v1889_v58 = vsel %vm1825_vm2, %v1734_v8, %v1857_v20 }
 0x6c2   :  { %v1869_v35 = vmul.f32 0.01, %v1770_v26  ;;  %vm1837_vm6 = vcmp.gt.f32.partialorder %v1770_v26, 0.0  ;;  %v1890_v50 = vsel %vm1826_vm1, %v1737_v9, %v1858_v40 }
 0x6c4   :  { %1819 = vmatmul.f32.gmra.mxu2 %v1517_v25  ;;  %v1901_v14 = vsel %vm1837_vm6, %v1770_v26, %v1869_v35  ;;  %v1887_v26 = vsel %vm1823_vm4, %v1728_v4, %v1855_v57  ;;  %v1925_v35 = vld [vmem:[%s3237_s15 + $0x30] sm:$0xff] }
 0x6c7   :  { %v1772_v29 = vpop.f32.mrf.mxu2 }
 0x6c8   :  { %v1773_v44 = vadd.f32 %v1772_v29, %v1628_v2  ;;  %v1558_v2 = vpop.permute.xlu0 %1557 }
 0x6c9   :  { %v1731_v45 = vadd.f32 %v1730_v30, %v1558_v2 }
 0x6ca   :  { %vm1838_vm5 = vcmp.gt.f32.partialorder %v1773_v44, 0.0  ;;  %v1870_v31 = vmul.f32 0.01, %v1773_v44 }
 0x6cb   :  { %v1856_v37 = vmul.f32 0.01, %v1731_v45  ;;  %vm1824_vm3 = vcmp.gt.f32.partialorder %v1731_v45, 0.0 }
 0x6cc   :  { %v1902_v34 = vsel %vm1838_vm5, %v1773_v44, %v1870_v31 }
 0x6cd   :  { %1951 = vmatpush.msra.mxu3 %v1902_v34  ;;  %v1888_v25 = vsel %vm1824_vm3, %v1731_v45, %v1856_v37 }
 0x6cf   :  { %v3161_v55 = vpop.f32.mrf.mxu2  ;;  %1952 = vmatpush.msra.mxu3 %v1901_v14  ;;  %v1698_v14 = vpop.permute.xlu1 %1697 }
 0x6d0   :  { %v1703_v38 = vpop.permute.xlu0 %1702 }
 0x6d1   :  { %1953 = vmatpush.msra.mxu3 %v1900_v61 }
 0x6d3   :  { %1954 = vmatpush.msra.mxu3 %v1899_v59  ;;  %v1678_v59 = vpop.permute.xlu2 %1677 }
 0x6d5   :  { %1955 = vmatpush.msra.mxu3 %v1898_v1 }
 0x6d7   :  { %v3165_v7 = vpop.f32.mrf.mxu2  ;;  %1956 = vmatpush.msra.mxu3 %v1897_v54  ;;  %v1683_v56 = vpop.permute.xlu1 %1682 }
 0x6d8   :  { %v1688_v61 = vpop.permute.xlu0 %1687 }
 0x6d9   :  { %1957 = vmatpush.msra.mxu3 %v1896_v51 }
 0x6db   :  { %1958 = vmatpush.msra.mxu3 %v1895_v42  ;;  %v1663_v43 = vpop.permute.xlu2 %1662 }
 0x6dd   :  { %1959 = vmatpush.msra.mxu3 %v1894_v6 }
 0x6df   :  { %v3171_v16 = vpop.f32.mrf.mxu2  ;;  %1960 = vmatpush.msra.mxu3 %v1893_v41  ;;  %v1668_v54 = vpop.permute.xlu1 %1667 }
 0x6e0   :  { %v1673_v1 = vpop.permute.xlu0 %1672 }
 0x6e1   :  { %1961 = vmatpush.msra.mxu3 %v1892_v11 }
 0x6e3   :  { %1962 = vmatpush.msra.mxu3 %v1891_v18  ;;  %v1648_v18 = vpop.permute.xlu2 %1647 }
 0x6e5   :  { %1963 = vmatpush.msra.mxu3 %v1890_v50 }
 0x6e7   :  { %v3173_v23 = vpop.f32.mrf.mxu2  ;;  %1964 = vmatpush.msra.mxu3 %v1889_v58  ;;  %v1653_v11 = vpop.permute.xlu1 %1652 }
 0x6e8   :  { %v1658_v41 = vpop.permute.xlu0 %1657 }
 0x6e9   :  { %1965 = vmatpush.msra.mxu3 %v1888_v25 }
 0x6eb   :  { %1966 = vmatpush.msra.mxu3 %v1887_v26 }
 0x6ec   :  { %1967 = vmatmul.f32.vlgmr.msra.gmra.mxu3 %v1919_v22  ;;  %v1785_v22 = vadd.f32 %v3173_v23, %v1648_v18 }
 0x6ee   :  { %vm1842_vm1 = vcmp.gt.f32.partialorder %v1785_v22, 0.0 }
 0x6ef   :  { %v3178_v29 = vpop.f32.mrf.mxu2 }
 0x6f0   :  { %v1788_v57 = vadd.f32 %v3178_v29, %v1653_v11 }
 0x6f2   :  { %vm1843_vm0 = vcmp.gt.f32.partialorder %v1788_v57, 0.0 }
 0x6f4   :  { %1970 = vmatmul.f32.gmra.mxu3 %v1921_v27 }
 0x6f7   :  { %v3183_v44 = vpop.f32.mrf.mxu2 }
 0x6f8   :  { %v1791_v20 = vadd.f32 %v3183_v44, %v1658_v41  ;;  %v1875_v44 = vmul.f32 0.01, %v1788_v57 }
 0x6fa   :  { %v1876_v26 = vmul.f32 0.01, %v1791_v20  ;;  %vm1844_vm15 = vcmp.gt.f32.partialorder %v1791_v20, 0.0 }
 0x6fc   :  { %1973 = vmatmul.f32.gmra.mxu3 %v1923_v28  ;;  %v1643_v28 = vpop.permute.xlu0 %1642 }
 0x6ff   :  { %v1793_v24 = vpop.f32.mrf.mxu2 }
 0x700   :  { %v1794_v40 = vadd.f32 %v1793_v24, %v1663_v43  ;;  %v1782_v24 = vadd.f32 %v3171_v16, %v1643_v28 }
 0x702   :  { %v1877_v58 = vmul.f32 0.01, %v1794_v40  ;;  %vm1845_vm14 = vcmp.gt.f32.partialorder %v1794_v40, 0.0  ;;  %vm1841_vm2 = vcmp.gt.f32.partialorder %v1782_v24, 0.0 }
 0x704   :  { %1976 = vmatmul.f32.gmra.mxu3 %v1925_v35  ;;  %v1909_v35 = vsel %vm1845_vm14, %v1794_v40, %v1877_v58 }
 0x707   :  { %v1796_v31 = vpop.f32.mrf.mxu2 }
 0x708   :  { %v1797_v15 = vadd.f32 %v1796_v31, %v1668_v54  ;;  %v1638_v31 = vpop.permute.xlu1 %1637 }
 0x709   :  { %v1779_v29 = vadd.f32 %v3165_v7, %v1638_v31 }
 0x70a   :  { %v1878_v37 = vmul.f32 0.01, %v1797_v15  ;;  %vm1846_vm13 = vcmp.gt.f32.partialorder %v1797_v15, 0.0 }
 0x70b   :  { %vm1840_vm3 = vcmp.gt.f32.partialorder %v1779_v29, 0.0 }
 0x70c   :  { %v1910_v27 = vsel %vm1846_vm13, %v1797_v15, %v1878_v37 }
 0x70f   :  { %v1799_v32 = vpop.f32.mrf.mxu2 }
 0x710   :  { %v1800_v39 = vadd.f32 %v1799_v32, %v1673_v1  ;;  %v1874_v32 = vmul.f32 0.01, %v1785_v22 }
 0x712   :  { %v1879_v17 = vmul.f32 0.01, %v1800_v39  ;;  %vm1847_vm12 = vcmp.gt.f32.partialorder %v1800_v39, 0.0  ;;  %v1906_v16 = vsel %vm1842_vm1, %v1785_v22, %v1874_v32 }
 0x714   :  { %v1911_v25 = vsel %vm1847_vm12, %v1800_v39, %v1879_v17 }
 0x717   :  { %v1802_v21 = vpop.f32.mrf.mxu2 }
 0x718   :  { %v1803_v9 = vadd.f32 %v1802_v21, %v1678_v59  ;;  %v1908_v21 = vsel %vm1844_vm15, %v1791_v20, %v1876_v26 }
 0x71a   :  { %v1880_v2 = vmul.f32 0.01, %v1803_v9  ;;  %vm1848_vm11 = vcmp.gt.f32.partialorder %v1803_v9, 0.0 }
 0x71c   :  { %v1912_v50 = vsel %vm1848_vm11, %v1803_v9, %v1880_v2 }
 0x71f   :  { %v1805_v19 = vpop.f32.mrf.mxu2 }
 0x720   :  { %v1806_v10 = vadd.f32 %v1805_v19, %v1683_v56  ;;  %v1633_v19 = vpop.permute.xlu2 %1632 }
 0x721   :  { %v1776_v23 = vadd.f32 %v3161_v55, %v1633_v19  ;;  %v1922_v55 = vld [vmem:[%s3237_s15 + $0x18] sm:$0xff] }
 0x722   :  { %v1881_v30 = vmul.f32 0.01, %v1806_v10  ;;  %vm1849_vm10 = vcmp.gt.f32.partialorder %v1806_v10, 0.0 }
 0x723   :  { %vm1839_vm4 = vcmp.gt.f32.partialorder %v1776_v23, 0.0 }
 0x724   :  { %v1913_v4 = vsel %vm1849_vm10, %v1806_v10, %v1881_v30 }
 0x727   :  { %v1808_v34 = vpop.f32.mrf.mxu2 }
 0x728   :  { %v1809_v5 = vadd.f32 %v1808_v34, %v1688_v61  ;;  %v1873_v34 = vmul.f32 0.01, %v1782_v24  ;;  %v1924_v61 = vld [vmem:[%s3237_s15 + $0x28] sm:$0xff] }
 0x72a   :  { %v1882_v6 = vmul.f32 0.01, %v1809_v5  ;;  %vm1850_vm9 = vcmp.gt.f32.partialorder %v1809_v5, 0.0 }
 0x72c   :  { %v1914_v45 = vsel %vm1850_vm9, %v1809_v5, %v1882_v6 }
 0x72f   :  { %v1811_v36 = vpop.f32.mrf.mxu2 }
 0x730   :  { %v1812_v3 = vadd.f32 %v1811_v36, %v1693_v60  ;;  %v1872_v36 = vmul.f32 0.01, %v1779_v29 }
 0x732   :  { %v1883_v42 = vmul.f32 0.01, %v1812_v3  ;;  %vm1851_vm8 = vcmp.gt.f32.partialorder %v1812_v3, 0.0  ;;  %v1904_v7 = vsel %vm1840_vm3, %v1779_v29, %v1872_v36 }
 0x734   :  { %v1915_v8 = vsel %vm1851_vm8, %v1812_v3, %v1883_v42 }
 0x737   :  { %v1814_v52 = vpop.f32.mrf.mxu2 }
 0x738   :  { %v1815_v53 = vadd.f32 %v1814_v52, %v1698_v14  ;;  %v1905_v14 = vsel %vm1841_vm2, %v1782_v24, %v1873_v34  ;;  %v1920_v52 = vld [vmem:[%s3237_s15 + $0x8] sm:$0xff] }
 0x73a   :  { %v1884_v49 = vmul.f32 0.01, %v1815_v53  ;;  %vm1852_vm7 = vcmp.gt.f32.partialorder %v1815_v53, 0.0 }
 0x73c   :  { %v1916_v13 = vsel %vm1852_vm7, %v1815_v53, %v1884_v49  ;;  %v1934_v53 = vpop.permute.xlu0 %1933  ;;  %v1944_v49 = vpop.permute.xlu2 %1943 }
 0x73f   :  { %v1817_v48 = vpop.f32.mrf.mxu2 }
 0x740   :  { %v1818_v63 = vadd.f32 %v1817_v48, %v1703_v38  ;;  %v1871_v38 = vmul.f32 0.01, %v1776_v23  ;;  %v1926_v48 = vld [vmem:[%s3237_s15 + $0x38] sm:$0xff] }
 0x742   :  { %v1885_v62 = vmul.f32 0.01, %v1818_v63  ;;  %vm1853_vm6 = vcmp.gt.f32.partialorder %v1818_v63, 0.0  ;;  %v1903_v60 = vsel %vm1839_vm4, %v1776_v23, %v1871_v38 }
 0x744   :  { %v1917_v12 = vsel %vm1853_vm6, %v1818_v63, %v1885_v62  ;;  %v1939_v62 = vpop.permute.xlu1 %1938  ;;  %v1949_v42 = vpop.permute.xlu0 %1948 }
 0x747   :  { %v1820_v47 = vpop.f32.mrf.mxu2 }
 0x748   :  { %v1821_v0 = vadd.f32 %v1820_v47, %v1708_v33  ;;  %v1907_v33 = vsel %vm1843_vm0, %v1788_v57, %v1875_v44 }
 0x74a   :  { %vm1854_vm5 = vcmp.gt.f32.partialorder %v1821_v0, 0.0  ;;  %v1886_v46 = vmul.f32 0.01, %v1821_v0 }
 0x74c   :  { %v1918_v51 = vsel %vm1854_vm5, %v1821_v0, %v1886_v46 }
 0x74d   :  { %1980 = vmatpush.msrb.mxu3 %v1918_v51 }
 0x74f   :  { %1981 = vmatpush.msrb.mxu3 %v1917_v12 }
 0x751   :  { %1982 = vmatpush.msrb.mxu3 %v1916_v13 }
 0x753   :  { %1983 = vmatpush.msrb.mxu3 %v1915_v8 }
 0x755   :  { %1984 = vmatpush.msrb.mxu3 %v1914_v45 }
 0x757   :  { %1985 = vmatpush.msrb.mxu3 %v1913_v4 }
 0x759   :  { %1986 = vmatpush.msrb.mxu3 %v1912_v50 }
 0x75b   :  { %1987 = vmatpush.msrb.mxu3 %v1911_v25 }
 0x75d   :  { %1988 = vmatpush.msrb.mxu3 %v1910_v27 }
 0x75f   :  { %1989 = vmatpush.msrb.mxu3 %v1909_v35 }
 0x761   :  { %1990 = vmatpush.msrb.mxu3 %v1908_v21 }
 0x763   :  { %1991 = vmatpush.msrb.mxu3 %v1907_v33 }
 0x765   :  { %1992 = vmatpush.msrb.mxu3 %v1906_v16 }
 0x767   :  { %1993 = vmatpush.msrb.mxu3 %v1905_v14 }
 0x769   :  { %1994 = vmatpush.msrb.mxu3 %v1904_v7 }
 0x76b   :  { %1995 = vmatpush.msrb.mxu3 %v1903_v60 }
 0x76c   :  { %1996 = vmatmul.f32.vlgmr.msrb.gmra.mxu3 %v1920_v52 }
 0x76f   :  { %v1968_v56 = vpop.f32.mrf.mxu3 }
 0x770   :  { %v1969_v0 = vadd.f32 %v1968_v56, %v1934_v53 }
 0x774   :  { %1999 = vmatmul.f32.gmra.mxu3 %v1922_v55 }
 0x777   :  { %v1971_v59 = vpop.f32.mrf.mxu3 }
 0x778   :  { %v1972_v46 = vadd.f32 %v1971_v59, %v1939_v62 }
 0x77c   :  { %2002 = vmatmul.f32.gmra.mxu3 %v1924_v61 }
 0x77f   :  { %v1974_v63 = vpop.f32.mrf.mxu3 }
 0x780   :  { %v1975_v51 = vadd.f32 %v1974_v63, %v1944_v49 }
 0x784   :  { %2005 = vmatmul.f32.gmra.mxu3 %v1926_v48 }
 0x787   :  { %v1977_v47 = vpop.f32.mrf.mxu3 }
 0x788   :  { %v1978_v12 = vadd.f32 %v1977_v47, %v1949_v42 }
 0x7ef   :  { %v1997_v1 = vpop.f32.mrf.mxu3 }
 0x7f0   :  { %v1998_v3 = vadd.f32 %v1997_v1, %v1969_v0 }
 0x7f2   :  { %2009 = vst [vmem:[%s3238_s17] sm:$0xff] %v1998_v3 }
 0x7f7   :  { %v2000_v54 = vpop.f32.mrf.mxu3 }
 0x7f8   :  { %v2001_v5 = vadd.f32 %v2000_v54, %v1972_v46 }
 0x7fa   :  { %2010 = vst [vmem:[%s3238_s17 + $0x8] sm:$0xff] %v2001_v5 }
 0x7ff   :  { %v2003_v43 = vpop.f32.mrf.mxu3 }
 0x800   :  { %v2004_v10 = vadd.f32 %v2003_v43, %v1975_v51 }
 0x802   :  { %2011 = vst [vmem:[%s3238_s17 + $0x10] sm:$0xff] %v2004_v10 }
 0x807   :  { %v2006_v9 = vpop.f32.mrf.mxu3 }
 0x808   :  { %v2007_v6 = vadd.f32 %v2006_v9, %v1978_v12 }
 0x80a   :  { %2012 = vst [vmem:[%s3238_s17 + $0x18] sm:$0xff] %v2007_v6 }

</bundles_post_ra>
